<compile_context>
chip_gen: v5e
topology: v5e:2x2
jax: 0.10.0
libtpu: 0.0.40
codegen_flags: <defaults>
</compile_context>

<pallas_src>
import math

import jax
import jax.numpy as jnp
from jax.experimental import pallas as pl
from jax.experimental.pallas import tpu as pltpu

# ---- model hyper-parameters (small, consistent with DecoderBlock.__init__) ----
N_HEADS = 4
D_MODEL = 32
D_FF = 64
D_K = 8
D_V = 8
P_DROP = 0.0          # dropout -> identity (inference)
LN_EPS = 1e-5

HDK = N_HEADS * D_K   # 32
HDV = N_HEADS * D_V   # 32


# ---------- Pallas kernel: decoder block for a block of Bb batch elements ----------
def decoder_block_kernel(
    x_ref, enc_ref, xbias_ref, sbias_ref,
    wqkv1, bqkv1, wo1, bo1, g1, be1,
    wq2, bq2, wkv2, bkv2, wo2, bo2, g2, be2,
    wf1, bf1, wf2, bf2, g3, be3,
    out_ref,
):
    Bb, T, D = x_ref.shape
    S = enc_ref.shape[1]
    N = Bb * T

    # flatten batch*seq rows: projections / layernorms / FFN run as (N, D) matmuls
    x = x_ref[...].reshape(N, D)
    enc = enc_ref[...].reshape(Bb * S, D)
    xbias = xbias_ref[...]      # (Bb, T, T) additive bias (0 keep / -1e9 masked)
    sbias = sbias_ref[...]      # (Bb, T, S)

    scale = 1.0 / math.sqrt(D_K)

    def layer_norm(v, g_ref, b_ref):
        mu = jnp.mean(v, axis=-1, keepdims=True)
        var = jnp.mean(jnp.square(v - mu), axis=-1, keepdims=True)
        return g_ref[...] * (v - mu) * jax.lax.rsqrt(var + LN_EPS) + b_ref[...]

    def attend(q, k, v, Tq, bias, wo_ref, bo_ref):
        # q: (Bb, Tq, H*Dk) already scaled; k: (Bb, Tk, H*Dk); v: (Bb, Tk, H*Dv)
        wo_full = wo_ref[...]                    # (H*Dv, D)
        acc = jnp.zeros((Bb * Tq, D_MODEL), jnp.float32)
        for h in range(N_HEADS):                 # static; each iteration batched over Bb
            qh = q[:, :, h * D_K:(h + 1) * D_K]
            kh = k[:, :, h * D_K:(h + 1) * D_K]
            vh = v[:, :, h * D_V:(h + 1) * D_V]
            # batched contraction on last dims (no explicit kh.T transpose)
            s = jnp.einsum('btd,bsd->bts', qh, kh,
                           preferred_element_type=jnp.float32) + bias
            p = jax.nn.softmax(s, axis=-1)
            ctx = jnp.einsum('bts,bsd->btd', p, vh,
                             preferred_element_type=jnp.float32)
            # concat-free output projection: concat(ctx_h) @ Wo == sum_h ctx_h @ Wo_h
            acc = acc + jnp.dot(ctx.reshape(Bb * Tq, D_V),
                                wo_full[h * D_V:(h + 1) * D_V, :],
                                preferred_element_type=jnp.float32)
        return acc + bo_ref[...]

    # 1) causal self-attention: single fused QKV matmul, then residual + norm1
    qkv = jnp.dot(x, wqkv1[...], preferred_element_type=jnp.float32) + bqkv1[...]
    q1 = qkv[:, :HDK].reshape(Bb, T, HDK) * scale      # scale once, not per score tile
    k1 = qkv[:, HDK:2 * HDK].reshape(Bb, T, HDK)
    v1 = qkv[:, 2 * HDK:].reshape(Bb, T, HDV)
    sa = attend(q1, k1, v1, T, xbias, wo1, bo1)
    x = layer_norm(x + sa, g1, be1)

    # 2) cross-attention over encoder outputs: fused KV matmul, then residual + norm2
    q2 = ((jnp.dot(x, wq2[...], preferred_element_type=jnp.float32) + bq2[...])
          * scale).reshape(Bb, T, HDK)
    kv = jnp.dot(enc, wkv2[...], preferred_element_type=jnp.float32) + bkv2[...]
    k2 = kv[:, :HDK].reshape(Bb, S, HDK)
    v2 = kv[:, HDK:].reshape(Bb, S, HDV)
    ca = attend(q2, k2, v2, T, sbias, wo2, bo2)
    x = layer_norm(x + ca, g2, be2)

    # 3) position-wise FFN (Linear -> ReLU -> Linear) + residual + norm3
    hidden = jnp.maximum(
        jnp.dot(x, wf1[...], preferred_element_type=jnp.float32) + bf1[...], 0.0)
    ffn = jnp.dot(hidden, wf2[...], preferred_element_type=jnp.float32) + bf2[...]
    y = layer_norm(x + ffn, g3, be3)

    out_ref[...] = y.reshape(Bb, T, D)


# ---------- parameter init (deterministic, synthetic) ----------
def init_params(key):
    def lin(k, fan_in, fan_out):
        kw, kb = jax.random.split(k)
        w = 0.05 * jax.random.normal(kw, (fan_in, fan_out), jnp.float32)
        b = 0.05 * jax.random.normal(kb, (1, fan_out), jnp.float32)
        return w, b

    keys = jax.random.split(key, 12)
    p = {}
    p["wq1"], p["bq1"] = lin(keys[0], D_MODEL, HDK)
    p["wk1"], p["bk1"] = lin(keys[1], D_MODEL, HDK)
    p["wv1"], p["bv1"] = lin(keys[2], D_MODEL, HDV)
    p["wo1"], p["bo1"] = lin(keys[3], HDV, D_MODEL)
    p["g1"], p["be1"] = jnp.ones((1, D_MODEL), jnp.float32), jnp.zeros((1, D_MODEL), jnp.float32)
    p["wq2"], p["bq2"] = lin(keys[4], D_MODEL, HDK)
    p["wk2"], p["bk2"] = lin(keys[5], D_MODEL, HDK)
    p["wv2"], p["bv2"] = lin(keys[6], D_MODEL, HDV)
    p["wo2"], p["bo2"] = lin(keys[7], HDV, D_MODEL)
    p["g2"], p["be2"] = jnp.ones((1, D_MODEL), jnp.float32), jnp.zeros((1, D_MODEL), jnp.float32)
    p["wf1"], p["bf1"] = lin(keys[8], D_MODEL, D_FF)
    p["wf2"], p["bf2"] = lin(keys[9], D_FF, D_MODEL)
    p["g3"], p["be3"] = jnp.ones((1, D_MODEL), jnp.float32), jnp.zeros((1, D_MODEL), jnp.float32)
    return p


# ---------- wrapper ----------
def decoder_block(x, x_mask, encoder_outputs, src_mask, params, num_blocks=None):
    B, T, D = x.shape
    S = encoder_outputs.shape[1]
    H, Dk, Dv = N_HEADS, D_K, D_V

    # Fuse batch elements per grid step; keep >= 2 parallel blocks when possible so
    # both v7x TensorCores get work (on v5e/v6e the 'parallel' axis is just a loop).
    if num_blocks is None:
        num_blocks = 2 if (B % 2 == 0 and B >= 2) else 1
    assert B % num_blocks == 0, "batch must divide evenly into grid blocks"
    Bb = B // num_blocks

    # masks -> additive biases in the wrapper (kernel just adds, no compare/select)
    xbias = jnp.where(x_mask > 0, 0.0, -1e9).astype(jnp.float32)
    sbias = jnp.where(src_mask > 0, 0.0, -1e9).astype(jnp.float32)

    # fuse tiny projection weights so the kernel issues fewer, fatter MXU matmuls
    weights = [
        jnp.concatenate([params["wq1"], params["wk1"], params["wv1"]], axis=1),  # (D, 96)
        jnp.concatenate([params["bq1"], params["bk1"], params["bv1"]], axis=1),  # (1, 96)
        params["wo1"], params["bo1"], params["g1"], params["be1"],
        params["wq2"], params["bq2"],
        jnp.concatenate([params["wk2"], params["wv2"]], axis=1),                 # (D, 64)
        jnp.concatenate([params["bk2"], params["bv2"]], axis=1),                 # (1, 64)
        params["wo2"], params["bo2"], params["g2"], params["be2"],
        params["wf1"], params["bf1"], params["wf2"], params["bf2"],
        params["g3"], params["be3"],
    ]

    def batched_spec(full_shape):
        rest = tuple(full_shape[1:])
        zeros = (0,) * len(rest)
        return pl.BlockSpec((Bb,) + rest, lambda i, zeros=zeros: (i,) + zeros)

    def full_spec(shape):
        zeros = (0,) * len(shape)
        return pl.BlockSpec(tuple(shape), lambda i, zeros=zeros: zeros)

    in_specs = [
        batched_spec(x.shape),
        batched_spec(encoder_outputs.shape),
        batched_spec(xbias.shape),
        batched_spec(sbias.shape),
    ] + [full_spec(w.shape) for w in weights]

    # advisory cost estimate for XLA scheduling around the custom call
    flops = (
        # self-attn projections + scores + context + out-proj
        2 * B * T * D * (H * Dk) * 3 + 2 * B * T * (H * Dv) * D
        + 2 * B * H * T * T * (Dk + Dv)
        # cross-attn projections + scores + context + out-proj
        + 2 * B * T * D * (H * Dk) + 2 * B * S * D * (H * Dk) + 2 * B * S * D * (H * Dv)
        + 2 * B * T * (H * Dv) * D + 2 * B * H * T * S * (Dk + Dv)
        # FFN
        + 2 * B * T * D * D_FF * 2
    )
    transcendentals = B * H * T * (T + S)  # softmax exps (LN rsqrt negligible)
    bytes_accessed = 4 * (x.size + encoder_outputs.size + xbias.size + sbias.size
                          + sum(int(w.size) for w in weights) + x.size)
    cost = pl.CostEstimate(flops=int(flops), transcendentals=int(transcendentals),
                           bytes_accessed=int(bytes_accessed))

    return pl.pallas_call(
        decoder_block_kernel,
        out_shape=jax.ShapeDtypeStruct((B, T, D), jnp.float32),
        grid_spec=pltpu.PrefetchScalarGridSpec(
            num_scalar_prefetch=0,
            grid=(num_blocks,),
            in_specs=in_specs,
            out_specs=batched_spec((B, T, D)),
        ),
        compiler_params=pltpu.CompilerParams(dimension_semantics=("parallel",)),
        cost_estimate=cost,
    )(x, encoder_outputs, xbias, sbias, *weights)


# ---------- pure-JAX reference (same math, no Pallas) ----------
def _layer_norm_ref(v, g, b):
    mu = jnp.mean(v, axis=-1, keepdims=True)
    var = jnp.mean(jnp.square(v - mu), axis=-1, keepdims=True)
    return g * (v - mu) * jax.lax.rsqrt(var + LN_EPS) + b


def decoder_block_ref(x, x_mask, enc, src_mask, p):
    hp = jax.lax.Precision.HIGHEST
    scale = 1.0 / math.sqrt(D_K)

    def dot(a, b):
        return jnp.dot(a, b, precision=hp, preferred_element_type=jnp.float32)

    def mha(q_in, kv_in, mask, wq, bq, wk, bk, wv, bv, wo, bo):
        bias = jnp.where(mask > 0, jnp.float32(0.0), jnp.float32(-1e9))
        q = (dot(q_in, wq) + bq) * scale
        k = dot(kv_in, wk) + bk
        v = dot(kv_in, wv) + bv
        heads = []
        for h in range(N_HEADS):
            qh = q[:, h * D_K:(h + 1) * D_K]
            kh = k[:, h * D_K:(h + 1) * D_K]
            vh = v[:, h * D_V:(h + 1) * D_V]
            s = dot(qh, kh.T) + bias
            heads.append(dot(jax.nn.softmax(s, axis=-1), vh))
        return dot(jnp.concatenate(heads, axis=-1), wo) + bo

    def one(xb, xm, eb, sm):
        sa = mha(xb, xb, xm, p["wq1"], p["bq1"], p["wk1"], p["bk1"],
                 p["wv1"], p["bv1"], p["wo1"], p["bo1"])
        xb = _layer_norm_ref(xb + sa, p["g1"], p["be1"])
        ca = mha(xb, eb, sm, p["wq2"], p["bq2"], p["wk2"], p["bk2"],
                 p["wv2"], p["bv2"], p["wo2"], p["bo2"])
        xb = _layer_norm_ref(xb + ca, p["g2"], p["be2"])
        hidden = jnp.maximum(dot(xb, p["wf1"]) + p["bf1"], 0.0)
        ffn = dot(hidden, p["wf2"]) + p["bf2"]
        return _layer_norm_ref(xb + ffn, p["g3"], p["be3"])

    return jax.vmap(one)(x, x_mask, enc, src_mask)


if __name__ == "__main__":
    B, T, S = 4, 8, 8
    key = jax.random.PRNGKey(0)
    k_x, k_e, k_p = jax.random.split(key, 3)

    x = jax.random.normal(k_x, (B, T, D_MODEL), jnp.float32)
    encoder_outputs = jax.random.normal(k_e, (B, S, D_MODEL), jnp.float32)

    # causal mask for self-attention; full (all-ones) mask for cross-attention
    x_mask = jnp.broadcast_to(jnp.tril(jnp.ones((T, T), jnp.float32)), (B, T, T))
    src_mask = jnp.ones((B, T, S), jnp.float32)

    params = init_params(k_p)

    out = decoder_block(x, x_mask, encoder_outputs, src_mask, params)
    out = jax.block_until_ready(out)

    ref = decoder_block_ref(x, x_mask, encoder_outputs, src_mask, params)
    assert out.shape == (B, T, D_MODEL)
    max_err = float(jnp.max(jnp.abs(out - ref)))
    assert jnp.allclose(out, ref, atol=2e-3, rtol=2e-3), f"mismatch vs reference ({max_err})"

    print("KERNEL_OK")
</pallas_src>

<mosaic_0001>
module attributes {stable_mosaic.version = 11 : i64} {
  func.func @decoder_block_kernel(%arg0: i32, %arg1: memref<2x8x32xf32, #tpu.memory_space<vmem>>, %arg2: memref<2x8x32xf32, #tpu.memory_space<vmem>>, %arg3: memref<2x8x8xf32, #tpu.memory_space<vmem>>, %arg4: memref<2x8x8xf32, #tpu.memory_space<vmem>>, %arg5: memref<32x96xf32, #tpu.memory_space<vmem>>, %arg6: memref<1x96xf32, #tpu.memory_space<vmem>>, %arg7: memref<32x32xf32, #tpu.memory_space<vmem>>, %arg8: memref<1x32xf32, #tpu.memory_space<vmem>>, %arg9: memref<1x32xf32, #tpu.memory_space<vmem>>, %arg10: memref<1x32xf32, #tpu.memory_space<vmem>>, %arg11: memref<32x32xf32, #tpu.memory_space<vmem>>, %arg12: memref<1x32xf32, #tpu.memory_space<vmem>>, %arg13: memref<32x64xf32, #tpu.memory_space<vmem>>, %arg14: memref<1x64xf32, #tpu.memory_space<vmem>>, %arg15: memref<32x32xf32, #tpu.memory_space<vmem>>, %arg16: memref<1x32xf32, #tpu.memory_space<vmem>>, %arg17: memref<1x32xf32, #tpu.memory_space<vmem>>, %arg18: memref<1x32xf32, #tpu.memory_space<vmem>>, %arg19: memref<32x64xf32, #tpu.memory_space<vmem>>, %arg20: memref<1x64xf32, #tpu.memory_space<vmem>>, %arg21: memref<64x32xf32, #tpu.memory_space<vmem>>, %arg22: memref<1x32xf32, #tpu.memory_space<vmem>>, %arg23: memref<1x32xf32, #tpu.memory_space<vmem>>, %arg24: memref<1x32xf32, #tpu.memory_space<vmem>>, %arg25: memref<2x8x32xf32, #tpu.memory_space<vmem>>) attributes {dimension_semantics = [#tpu.dimension_semantics<parallel>], iteration_bounds = array<i64: 2>, scalar_prefetch = 0 : i64, scratch_operands = 0 : i64, tpu.core_type = #tpu.core_type<tc>, window_params = [{transform_indices = @transform_0, window_bounds = array<i64: 2, 8, 32>}, {transform_indices = @transform_1, window_bounds = array<i64: 2, 8, 32>}, {transform_indices = @transform_2, window_bounds = array<i64: 2, 8, 8>}, {transform_indices = @transform_3, window_bounds = array<i64: 2, 8, 8>}, {pipeline_mode = #tpu.pipeline_mode<synchronous>, transform_indices = @transform_4, window_bounds = array<i64: 32, 96>}, {pipeline_mode = #tpu.pipeline_mode<synchronous>, transform_indices = @transform_5, window_bounds = array<i64: 1, 96>}, {pipeline_mode = #tpu.pipeline_mode<synchronous>, transform_indices = @transform_6, window_bounds = array<i64: 32, 32>}, {pipeline_mode = #tpu.pipeline_mode<synchronous>, transform_indices = @transform_7, window_bounds = array<i64: 1, 32>}, {pipeline_mode = #tpu.pipeline_mode<synchronous>, transform_indices = @transform_8, window_bounds = array<i64: 1, 32>}, {pipeline_mode = #tpu.pipeline_mode<synchronous>, transform_indices = @transform_9, window_bounds = array<i64: 1, 32>}, {pipeline_mode = #tpu.pipeline_mode<synchronous>, transform_indices = @transform_10, window_bounds = array<i64: 32, 32>}, {pipeline_mode = #tpu.pipeline_mode<synchronous>, transform_indices = @transform_11, window_bounds = array<i64: 1, 32>}, {pipeline_mode = #tpu.pipeline_mode<synchronous>, transform_indices = @transform_12, window_bounds = array<i64: 32, 64>}, {pipeline_mode = #tpu.pipeline_mode<synchronous>, transform_indices = @transform_13, window_bounds = array<i64: 1, 64>}, {pipeline_mode = #tpu.pipeline_mode<synchronous>, transform_indices = @transform_14, window_bounds = array<i64: 32, 32>}, {pipeline_mode = #tpu.pipeline_mode<synchronous>, transform_indices = @transform_15, window_bounds = array<i64: 1, 32>}, {pipeline_mode = #tpu.pipeline_mode<synchronous>, transform_indices = @transform_16, window_bounds = array<i64: 1, 32>}, {pipeline_mode = #tpu.pipeline_mode<synchronous>, transform_indices = @transform_17, window_bounds = array<i64: 1, 32>}, {pipeline_mode = #tpu.pipeline_mode<synchronous>, transform_indices = @transform_18, window_bounds = array<i64: 32, 64>}, {pipeline_mode = #tpu.pipeline_mode<synchronous>, transform_indices = @transform_19, window_bounds = array<i64: 1, 64>}, {pipeline_mode = #tpu.pipeline_mode<synchronous>, transform_indices = @transform_20, window_bounds = array<i64: 64, 32>}, {pipeline_mode = #tpu.pipeline_mode<synchronous>, transform_indices = @transform_21, window_bounds = array<i64: 1, 32>}, {pipeline_mode = #tpu.pipeline_mode<synchronous>, transform_indices = @transform_22, window_bounds = array<i64: 1, 32>}, {pipeline_mode = #tpu.pipeline_mode<synchronous>, transform_indices = @transform_23, window_bounds = array<i64: 1, 32>}, {transform_indices = @transform_24, window_bounds = array<i64: 2, 8, 32>}]} {
    %c0 = arith.constant 0 : index
    %c0_0 = arith.constant 0 : index
    %c0_1 = arith.constant 0 : index
    %0 = vector.load %arg1[%c0, %c0_0, %c0_1] : memref<2x8x32xf32, #tpu.memory_space<vmem>>, vector<2x8x32xf32>
    %1 = vector.shape_cast %0 : vector<2x8x32xf32> to vector<16x32xf32>
    %c0_2 = arith.constant 0 : index
    %c0_3 = arith.constant 0 : index
    %c0_4 = arith.constant 0 : index
    %2 = vector.load %arg2[%c0_2, %c0_3, %c0_4] : memref<2x8x32xf32, #tpu.memory_space<vmem>>, vector<2x8x32xf32>
    %3 = vector.shape_cast %2 : vector<2x8x32xf32> to vector<16x32xf32>
    %c0_5 = arith.constant 0 : index
    %c0_6 = arith.constant 0 : index
    %c0_7 = arith.constant 0 : index
    %4 = vector.load %arg3[%c0_5, %c0_6, %c0_7] : memref<2x8x8xf32, #tpu.memory_space<vmem>>, vector<2x8x8xf32>
    %c0_8 = arith.constant 0 : index
    %c0_9 = arith.constant 0 : index
    %c0_10 = arith.constant 0 : index
    %5 = vector.load %arg4[%c0_8, %c0_9, %c0_10] : memref<2x8x8xf32, #tpu.memory_space<vmem>>, vector<2x8x8xf32>
    %c0_11 = arith.constant 0 : index
    %c0_12 = arith.constant 0 : index
    %6 = vector.load %arg5[%c0_11, %c0_12] : memref<32x96xf32, #tpu.memory_space<vmem>>, vector<32x96xf32>
    %cst = arith.constant dense<0.000000e+00> : vector<16x96xf32>
    %7 = tpu.matmul %1, %6, %cst {dimension_numbers = #tpu.dot_dimension_numbers<[1], [0], [0], [1], [0, 0, 1, 1], [], []>} : vector<16x32xf32>, vector<32x96xf32>, vector<16x96xf32> -> vector<16x96xf32>
    %c0_13 = arith.constant 0 : index
    %c0_14 = arith.constant 0 : index
    %8 = vector.load %arg6[%c0_13, %c0_14] : memref<1x96xf32, #tpu.memory_space<vmem>>, vector<1x96xf32>
    %9 = vector.broadcast %8 : vector<1x96xf32> to vector<16x96xf32>
    %10 = arith.addf %7, %9 : vector<16x96xf32>
    %11 = vector.extract_strided_slice %10 {offsets = [0, 0], sizes = [16, 32], strides = [1, 1]} : vector<16x96xf32> to vector<16x32xf32>
    %12 = vector.shape_cast %11 : vector<16x32xf32> to vector<2x8x32xf32>
    %cst_15 = arith.constant 0.353553385 : f32
    %13 = vector.broadcast %cst_15 : f32 to vector<2x8x32xf32>
    %14 = arith.mulf %12, %13 : vector<2x8x32xf32>
    %15 = vector.extract_strided_slice %10 {offsets = [0, 32], sizes = [16, 32], strides = [1, 1]} : vector<16x96xf32> to vector<16x32xf32>
    %16 = vector.shape_cast %15 : vector<16x32xf32> to vector<2x8x32xf32>
    %17 = vector.extract_strided_slice %10 {offsets = [0, 64], sizes = [16, 32], strides = [1, 1]} : vector<16x96xf32> to vector<16x32xf32>
    %18 = vector.shape_cast %17 : vector<16x32xf32> to vector<2x8x32xf32>
    %c0_16 = arith.constant 0 : index
    %c0_17 = arith.constant 0 : index
    %19 = vector.load %arg7[%c0_16, %c0_17] : memref<32x32xf32, #tpu.memory_space<vmem>>, vector<32x32xf32>
    %cst_18 = arith.constant 0.000000e+00 : f32
    %20 = vector.broadcast %cst_18 : f32 to vector<16x32xf32>
    %21 = vector.extract_strided_slice %14 {offsets = [0, 0, 0], sizes = [2, 8, 8], strides = [1, 1, 1]} : vector<2x8x32xf32> to vector<2x8x8xf32>
    %22 = vector.extract_strided_slice %16 {offsets = [0, 0, 0], sizes = [2, 8, 8], strides = [1, 1, 1]} : vector<2x8x32xf32> to vector<2x8x8xf32>
    %23 = vector.extract_strided_slice %18 {offsets = [0, 0, 0], sizes = [2, 8, 8], strides = [1, 1, 1]} : vector<2x8x32xf32> to vector<2x8x8xf32>
    "tpu.trace_start"() <{level = 10 : i32, message = "btd,bsd->bts"}> : () -> ()
    %cst_19 = arith.constant dense<0.000000e+00> : vector<2x8x8xf32>
    %24 = tpu.matmul %21, %22, %cst_19 {dimension_numbers = #tpu.dot_dimension_numbers<[2], [2], [1], [1], [0, 0, 0, 1, 1, 1], [0], [0]>} : vector<2x8x8xf32>, vector<2x8x8xf32>, vector<2x8x8xf32> -> vector<2x8x8xf32>
    "tpu.trace_stop"() : () -> ()
    %25 = arith.addf %24, %4 : vector<2x8x8xf32>
    %cst_20 = arith.constant dense<0xFF800000> : vector<2x8xf32>
    %26 = vector.multi_reduction <maximumf>, %25, %cst_20 [2] : vector<2x8x8xf32> to vector<2x8xf32>
    %cst_21 = arith.constant 0xFF800000 : f32
    %27 = vector.broadcast %cst_21 : f32 to vector<2x8xf32>
    %28 = arith.maximumf %27, %26 : vector<2x8xf32>
    %29 = vector.shape_cast %28 : vector<2x8xf32> to vector<2x8x1xf32>
    %30 = vector.broadcast %29 : vector<2x8x1xf32> to vector<2x8x8xf32>
    %31 = arith.subf %25, %30 : vector<2x8x8xf32>
    %32 = math.exp %31 : vector<2x8x8xf32>
    %cst_22 = arith.constant dense<0.000000e+00> : vector<2x8xf32>
    %33 = vector.multi_reduction <add>, %32, %cst_22 [2] : vector<2x8x8xf32> to vector<2x8xf32>
    %34 = vector.shape_cast %33 : vector<2x8xf32> to vector<2x8x1xf32>
    %35 = vector.broadcast %34 : vector<2x8x1xf32> to vector<2x8x8xf32>
    %36 = arith.divf %32, %35 : vector<2x8x8xf32>
    "tpu.trace_start"() <{level = 10 : i32, message = "bts,bsd->btd"}> : () -> ()
    %cst_23 = arith.constant dense<0.000000e+00> : vector<2x8x8xf32>
    %37 = tpu.matmul %36, %23, %cst_23 {dimension_numbers = #tpu.dot_dimension_numbers<[2], [1], [1], [2], [0, 0, 0, 1, 1, 2], [0], [0]>} : vector<2x8x8xf32>, vector<2x8x8xf32>, vector<2x8x8xf32> -> vector<2x8x8xf32>
    "tpu.trace_stop"() : () -> ()
    %38 = vector.shape_cast %37 : vector<2x8x8xf32> to vector<16x8xf32>
    %39 = vector.extract_strided_slice %19 {offsets = [0, 0], sizes = [8, 32], strides = [1, 1]} : vector<32x32xf32> to vector<8x32xf32>
    %cst_24 = arith.constant dense<0.000000e+00> : vector<16x32xf32>
    %40 = tpu.matmul %38, %39, %cst_24 {dimension_numbers = #tpu.dot_dimension_numbers<[1], [0], [0], [1], [0, 0, 1, 1], [], []>} : vector<16x8xf32>, vector<8x32xf32>, vector<16x32xf32> -> vector<16x32xf32>
    %41 = arith.addf %20, %40 : vector<16x32xf32>
    %42 = vector.extract_strided_slice %14 {offsets = [0, 0, 8], sizes = [2, 8, 8], strides = [1, 1, 1]} : vector<2x8x32xf32> to vector<2x8x8xf32>
    %43 = vector.extract_strided_slice %16 {offsets = [0, 0, 8], sizes = [2, 8, 8], strides = [1, 1, 1]} : vector<2x8x32xf32> to vector<2x8x8xf32>
    %44 = vector.extract_strided_slice %18 {offsets = [0, 0, 8], sizes = [2, 8, 8], strides = [1, 1, 1]} : vector<2x8x32xf32> to vector<2x8x8xf32>
    "tpu.trace_start"() <{level = 10 : i32, message = "btd,bsd->bts"}> : () -> ()
    %cst_25 = arith.constant dense<0.000000e+00> : vector<2x8x8xf32>
    %45 = tpu.matmul %42, %43, %cst_25 {dimension_numbers = #tpu.dot_dimension_numbers<[2], [2], [1], [1], [0, 0, 0, 1, 1, 1], [0], [0]>} : vector<2x8x8xf32>, vector<2x8x8xf32>, vector<2x8x8xf32> -> vector<2x8x8xf32>
    "tpu.trace_stop"() : () -> ()
    %46 = arith.addf %45, %4 : vector<2x8x8xf32>
    %cst_26 = arith.constant dense<0xFF800000> : vector<2x8xf32>
    %47 = vector.multi_reduction <maximumf>, %46, %cst_26 [2] : vector<2x8x8xf32> to vector<2x8xf32>
    %cst_27 = arith.constant 0xFF800000 : f32
    %48 = vector.broadcast %cst_27 : f32 to vector<2x8xf32>
    %49 = arith.maximumf %48, %47 : vector<2x8xf32>
    %50 = vector.shape_cast %49 : vector<2x8xf32> to vector<2x8x1xf32>
    %51 = vector.broadcast %50 : vector<2x8x1xf32> to vector<2x8x8xf32>
    %52 = arith.subf %46, %51 : vector<2x8x8xf32>
    %53 = math.exp %52 : vector<2x8x8xf32>
    %cst_28 = arith.constant dense<0.000000e+00> : vector<2x8xf32>
    %54 = vector.multi_reduction <add>, %53, %cst_28 [2] : vector<2x8x8xf32> to vector<2x8xf32>
    %55 = vector.shape_cast %54 : vector<2x8xf32> to vector<2x8x1xf32>
    %56 = vector.broadcast %55 : vector<2x8x1xf32> to vector<2x8x8xf32>
    %57 = arith.divf %53, %56 : vector<2x8x8xf32>
    "tpu.trace_start"() <{level = 10 : i32, message = "bts,bsd->btd"}> : () -> ()
    %cst_29 = arith.constant dense<0.000000e+00> : vector<2x8x8xf32>
    %58 = tpu.matmul %57, %44, %cst_29 {dimension_numbers = #tpu.dot_dimension_numbers<[2], [1], [1], [2], [0, 0, 0, 1, 1, 2], [0], [0]>} : vector<2x8x8xf32>, vector<2x8x8xf32>, vector<2x8x8xf32> -> vector<2x8x8xf32>
    "tpu.trace_stop"() : () -> ()
    %59 = vector.shape_cast %58 : vector<2x8x8xf32> to vector<16x8xf32>
    %60 = vector.extract_strided_slice %19 {offsets = [8, 0], sizes = [8, 32], strides = [1, 1]} : vector<32x32xf32> to vector<8x32xf32>
    %cst_30 = arith.constant dense<0.000000e+00> : vector<16x32xf32>
    %61 = tpu.matmul %59, %60, %cst_30 {dimension_numbers = #tpu.dot_dimension_numbers<[1], [0], [0], [1], [0, 0, 1, 1], [], []>} : vector<16x8xf32>, vector<8x32xf32>, vector<16x32xf32> -> vector<16x32xf32>
    %62 = arith.addf %41, %61 : vector<16x32xf32>
    %63 = vector.extract_strided_slice %14 {offsets = [0, 0, 16], sizes = [2, 8, 8], strides = [1, 1, 1]} : vector<2x8x32xf32> to vector<2x8x8xf32>
    %64 = vector.extract_strided_slice %16 {offsets = [0, 0, 16], sizes = [2, 8, 8], strides = [1, 1, 1]} : vector<2x8x32xf32> to vector<2x8x8xf32>
    %65 = vector.extract_strided_slice %18 {offsets = [0, 0, 16], sizes = [2, 8, 8], strides = [1, 1, 1]} : vector<2x8x32xf32> to vector<2x8x8xf32>
    "tpu.trace_start"() <{level = 10 : i32, message = "btd,bsd->bts"}> : () -> ()
    %cst_31 = arith.constant dense<0.000000e+00> : vector<2x8x8xf32>
    %66 = tpu.matmul %63, %64, %cst_31 {dimension_numbers = #tpu.dot_dimension_numbers<[2], [2], [1], [1], [0, 0, 0, 1, 1, 1], [0], [0]>} : vector<2x8x8xf32>, vector<2x8x8xf32>, vector<2x8x8xf32> -> vector<2x8x8xf32>
    "tpu.trace_stop"() : () -> ()
    %67 = arith.addf %66, %4 : vector<2x8x8xf32>
    %cst_32 = arith.constant dense<0xFF800000> : vector<2x8xf32>
    %68 = vector.multi_reduction <maximumf>, %67, %cst_32 [2] : vector<2x8x8xf32> to vector<2x8xf32>
    %cst_33 = arith.constant 0xFF800000 : f32
    %69 = vector.broadcast %cst_33 : f32 to vector<2x8xf32>
    %70 = arith.maximumf %69, %68 : vector<2x8xf32>
    %71 = vector.shape_cast %70 : vector<2x8xf32> to vector<2x8x1xf32>
    %72 = vector.broadcast %71 : vector<2x8x1xf32> to vector<2x8x8xf32>
    %73 = arith.subf %67, %72 : vector<2x8x8xf32>
    %74 = math.exp %73 : vector<2x8x8xf32>
    %cst_34 = arith.constant dense<0.000000e+00> : vector<2x8xf32>
    %75 = vector.multi_reduction <add>, %74, %cst_34 [2] : vector<2x8x8xf32> to vector<2x8xf32>
    %76 = vector.shape_cast %75 : vector<2x8xf32> to vector<2x8x1xf32>
    %77 = vector.broadcast %76 : vector<2x8x1xf32> to vector<2x8x8xf32>
    %78 = arith.divf %74, %77 : vector<2x8x8xf32>
    "tpu.trace_start"() <{level = 10 : i32, message = "bts,bsd->btd"}> : () -> ()
    %cst_35 = arith.constant dense<0.000000e+00> : vector<2x8x8xf32>
    %79 = tpu.matmul %78, %65, %cst_35 {dimension_numbers = #tpu.dot_dimension_numbers<[2], [1], [1], [2], [0, 0, 0, 1, 1, 2], [0], [0]>} : vector<2x8x8xf32>, vector<2x8x8xf32>, vector<2x8x8xf32> -> vector<2x8x8xf32>
    "tpu.trace_stop"() : () -> ()
    %80 = vector.shape_cast %79 : vector<2x8x8xf32> to vector<16x8xf32>
    %81 = vector.extract_strided_slice %19 {offsets = [16, 0], sizes = [8, 32], strides = [1, 1]} : vector<32x32xf32> to vector<8x32xf32>
    %cst_36 = arith.constant dense<0.000000e+00> : vector<16x32xf32>
    %82 = tpu.matmul %80, %81, %cst_36 {dimension_numbers = #tpu.dot_dimension_numbers<[1], [0], [0], [1], [0, 0, 1, 1], [], []>} : vector<16x8xf32>, vector<8x32xf32>, vector<16x32xf32> -> vector<16x32xf32>
    %83 = arith.addf %62, %82 : vector<16x32xf32>
    %84 = vector.extract_strided_slice %14 {offsets = [0, 0, 24], sizes = [2, 8, 8], strides = [1, 1, 1]} : vector<2x8x32xf32> to vector<2x8x8xf32>
    %85 = vector.extract_strided_slice %16 {offsets = [0, 0, 24], sizes = [2, 8, 8], strides = [1, 1, 1]} : vector<2x8x32xf32> to vector<2x8x8xf32>
    %86 = vector.extract_strided_slice %18 {offsets = [0, 0, 24], sizes = [2, 8, 8], strides = [1, 1, 1]} : vector<2x8x32xf32> to vector<2x8x8xf32>
    "tpu.trace_start"() <{level = 10 : i32, message = "btd,bsd->bts"}> : () -> ()
    %cst_37 = arith.constant dense<0.000000e+00> : vector<2x8x8xf32>
    %87 = tpu.matmul %84, %85, %cst_37 {dimension_numbers = #tpu.dot_dimension_numbers<[2], [2], [1], [1], [0, 0, 0, 1, 1, 1], [0], [0]>} : vector<2x8x8xf32>, vector<2x8x8xf32>, vector<2x8x8xf32> -> vector<2x8x8xf32>
    "tpu.trace_stop"() : () -> ()
    %88 = arith.addf %87, %4 : vector<2x8x8xf32>
    %cst_38 = arith.constant dense<0xFF800000> : vector<2x8xf32>
    %89 = vector.multi_reduction <maximumf>, %88, %cst_38 [2] : vector<2x8x8xf32> to vector<2x8xf32>
    %cst_39 = arith.constant 0xFF800000 : f32
    %90 = vector.broadcast %cst_39 : f32 to vector<2x8xf32>
    %91 = arith.maximumf %90, %89 : vector<2x8xf32>
    %92 = vector.shape_cast %91 : vector<2x8xf32> to vector<2x8x1xf32>
    %93 = vector.broadcast %92 : vector<2x8x1xf32> to vector<2x8x8xf32>
    %94 = arith.subf %88, %93 : vector<2x8x8xf32>
    %95 = math.exp %94 : vector<2x8x8xf32>
    %cst_40 = arith.constant dense<0.000000e+00> : vector<2x8xf32>
    %96 = vector.multi_reduction <add>, %95, %cst_40 [2] : vector<2x8x8xf32> to vector<2x8xf32>
    %97 = vector.shape_cast %96 : vector<2x8xf32> to vector<2x8x1xf32>
    %98 = vector.broadcast %97 : vector<2x8x1xf32> to vector<2x8x8xf32>
    %99 = arith.divf %95, %98 : vector<2x8x8xf32>
    "tpu.trace_start"() <{level = 10 : i32, message = "bts,bsd->btd"}> : () -> ()
    %cst_41 = arith.constant dense<0.000000e+00> : vector<2x8x8xf32>
    %100 = tpu.matmul %99, %86, %cst_41 {dimension_numbers = #tpu.dot_dimension_numbers<[2], [1], [1], [2], [0, 0, 0, 1, 1, 2], [0], [0]>} : vector<2x8x8xf32>, vector<2x8x8xf32>, vector<2x8x8xf32> -> vector<2x8x8xf32>
    "tpu.trace_stop"() : () -> ()
    %101 = vector.shape_cast %100 : vector<2x8x8xf32> to vector<16x8xf32>
    %102 = vector.extract_strided_slice %19 {offsets = [24, 0], sizes = [8, 32], strides = [1, 1]} : vector<32x32xf32> to vector<8x32xf32>
    %cst_42 = arith.constant dense<0.000000e+00> : vector<16x32xf32>
    %103 = tpu.matmul %101, %102, %cst_42 {dimension_numbers = #tpu.dot_dimension_numbers<[1], [0], [0], [1], [0, 0, 1, 1], [], []>} : vector<16x8xf32>, vector<8x32xf32>, vector<16x32xf32> -> vector<16x32xf32>
    %104 = arith.addf %83, %103 : vector<16x32xf32>
    %c0_43 = arith.constant 0 : index
    %c0_44 = arith.constant 0 : index
    %105 = vector.load %arg8[%c0_43, %c0_44] : memref<1x32xf32, #tpu.memory_space<vmem>>, vector<1x32xf32>
    %106 = vector.broadcast %105 : vector<1x32xf32> to vector<16x32xf32>
    %107 = arith.addf %104, %106 : vector<16x32xf32>
    %108 = arith.addf %1, %107 : vector<16x32xf32>
    %cst_45 = arith.constant dense<0.000000e+00> : vector<16xf32>
    %109 = vector.multi_reduction <add>, %108, %cst_45 [1] : vector<16x32xf32> to vector<16xf32>
    %110 = vector.shape_cast %109 : vector<16xf32> to vector<16x1xf32>
    %cst_46 = arith.constant 3.200000e+01 : f32
    %111 = vector.broadcast %cst_46 : f32 to vector<16x1xf32>
    %112 = arith.divf %110, %111 : vector<16x1xf32>
    %113 = vector.broadcast %112 : vector<16x1xf32> to vector<16x32xf32>
    %114 = arith.subf %108, %113 : vector<16x32xf32>
    %115 = arith.mulf %114, %114 : vector<16x32xf32>
    %cst_47 = arith.constant dense<0.000000e+00> : vector<16xf32>
    %116 = vector.multi_reduction <add>, %115, %cst_47 [1] : vector<16x32xf32> to vector<16xf32>
    %117 = vector.shape_cast %116 : vector<16xf32> to vector<16x1xf32>
    %cst_48 = arith.constant 3.200000e+01 : f32
    %118 = vector.broadcast %cst_48 : f32 to vector<16x1xf32>
    %119 = arith.divf %117, %118 : vector<16x1xf32>
    %c0_49 = arith.constant 0 : index
    %c0_50 = arith.constant 0 : index
    %120 = vector.load %arg9[%c0_49, %c0_50] : memref<1x32xf32, #tpu.memory_space<vmem>>, vector<1x32xf32>
    %121 = vector.broadcast %112 : vector<16x1xf32> to vector<16x32xf32>
    %122 = arith.subf %108, %121 : vector<16x32xf32>
    %123 = vector.broadcast %120 : vector<1x32xf32> to vector<16x32xf32>
    %124 = arith.mulf %123, %122 : vector<16x32xf32>
    %cst_51 = arith.constant 9.99999974E-6 : f32
    %125 = vector.broadcast %cst_51 : f32 to vector<16x1xf32>
    %126 = arith.addf %119, %125 : vector<16x1xf32>
    %127 = math.rsqrt %126 : vector<16x1xf32>
    %128 = vector.broadcast %127 : vector<16x1xf32> to vector<16x32xf32>
    %129 = arith.mulf %124, %128 : vector<16x32xf32>
    %c0_52 = arith.constant 0 : index
    %c0_53 = arith.constant 0 : index
    %130 = vector.load %arg10[%c0_52, %c0_53] : memref<1x32xf32, #tpu.memory_space<vmem>>, vector<1x32xf32>
    %131 = vector.broadcast %130 : vector<1x32xf32> to vector<16x32xf32>
    %132 = arith.addf %129, %131 : vector<16x32xf32>
    %c0_54 = arith.constant 0 : index
    %c0_55 = arith.constant 0 : index
    %133 = vector.load %arg11[%c0_54, %c0_55] : memref<32x32xf32, #tpu.memory_space<vmem>>, vector<32x32xf32>
    %cst_56 = arith.constant dense<0.000000e+00> : vector<16x32xf32>
    %134 = tpu.matmul %132, %133, %cst_56 {dimension_numbers = #tpu.dot_dimension_numbers<[1], [0], [0], [1], [0, 0, 1, 1], [], []>} : vector<16x32xf32>, vector<32x32xf32>, vector<16x32xf32> -> vector<16x32xf32>
    %c0_57 = arith.constant 0 : index
    %c0_58 = arith.constant 0 : index
    %135 = vector.load %arg12[%c0_57, %c0_58] : memref<1x32xf32, #tpu.memory_space<vmem>>, vector<1x32xf32>
    %136 = vector.broadcast %135 : vector<1x32xf32> to vector<16x32xf32>
    %137 = arith.addf %134, %136 : vector<16x32xf32>
    %cst_59 = arith.constant 0.353553385 : f32
    %138 = vector.broadcast %cst_59 : f32 to vector<16x32xf32>
    %139 = arith.mulf %137, %138 : vector<16x32xf32>
    %140 = vector.shape_cast %139 : vector<16x32xf32> to vector<2x8x32xf32>
    %c0_60 = arith.constant 0 : index
    %c0_61 = arith.constant 0 : index
    %141 = vector.load %arg13[%c0_60, %c0_61] : memref<32x64xf32, #tpu.memory_space<vmem>>, vector<32x64xf32>
    %cst_62 = arith.constant dense<0.000000e+00> : vector<16x64xf32>
    %142 = tpu.matmul %3, %141, %cst_62 {dimension_numbers = #tpu.dot_dimension_numbers<[1], [0], [0], [1], [0, 0, 1, 1], [], []>} : vector<16x32xf32>, vector<32x64xf32>, vector<16x64xf32> -> vector<16x64xf32>
    %c0_63 = arith.constant 0 : index
    %c0_64 = arith.constant 0 : index
    %143 = vector.load %arg14[%c0_63, %c0_64] : memref<1x64xf32, #tpu.memory_space<vmem>>, vector<1x64xf32>
    %144 = vector.broadcast %143 : vector<1x64xf32> to vector<16x64xf32>
    %145 = arith.addf %142, %144 : vector<16x64xf32>
    %146 = vector.extract_strided_slice %145 {offsets = [0, 0], sizes = [16, 32], strides = [1, 1]} : vector<16x64xf32> to vector<16x32xf32>
    %147 = vector.shape_cast %146 : vector<16x32xf32> to vector<2x8x32xf32>
    %148 = vector.extract_strided_slice %145 {offsets = [0, 32], sizes = [16, 32], strides = [1, 1]} : vector<16x64xf32> to vector<16x32xf32>
    %149 = vector.shape_cast %148 : vector<16x32xf32> to vector<2x8x32xf32>
    %c0_65 = arith.constant 0 : index
    %c0_66 = arith.constant 0 : index
    %150 = vector.load %arg15[%c0_65, %c0_66] : memref<32x32xf32, #tpu.memory_space<vmem>>, vector<32x32xf32>
    %cst_67 = arith.constant 0.000000e+00 : f32
    %151 = vector.broadcast %cst_67 : f32 to vector<16x32xf32>
    %152 = vector.extract_strided_slice %140 {offsets = [0, 0, 0], sizes = [2, 8, 8], strides = [1, 1, 1]} : vector<2x8x32xf32> to vector<2x8x8xf32>
    %153 = vector.extract_strided_slice %147 {offsets = [0, 0, 0], sizes = [2, 8, 8], strides = [1, 1, 1]} : vector<2x8x32xf32> to vector<2x8x8xf32>
    %154 = vector.extract_strided_slice %149 {offsets = [0, 0, 0], sizes = [2, 8, 8], strides = [1, 1, 1]} : vector<2x8x32xf32> to vector<2x8x8xf32>
    "tpu.trace_start"() <{level = 10 : i32, message = "btd,bsd->bts"}> : () -> ()
    %cst_68 = arith.constant dense<0.000000e+00> : vector<2x8x8xf32>
    %155 = tpu.matmul %152, %153, %cst_68 {dimension_numbers = #tpu.dot_dimension_numbers<[2], [2], [1], [1], [0, 0, 0, 1, 1, 1], [0], [0]>} : vector<2x8x8xf32>, vector<2x8x8xf32>, vector<2x8x8xf32> -> vector<2x8x8xf32>
    "tpu.trace_stop"() : () -> ()
    %156 = arith.addf %155, %5 : vector<2x8x8xf32>
    %cst_69 = arith.constant dense<0xFF800000> : vector<2x8xf32>
    %157 = vector.multi_reduction <maximumf>, %156, %cst_69 [2] : vector<2x8x8xf32> to vector<2x8xf32>
    %cst_70 = arith.constant 0xFF800000 : f32
    %158 = vector.broadcast %cst_70 : f32 to vector<2x8xf32>
    %159 = arith.maximumf %158, %157 : vector<2x8xf32>
    %160 = vector.shape_cast %159 : vector<2x8xf32> to vector<2x8x1xf32>
    %161 = vector.broadcast %160 : vector<2x8x1xf32> to vector<2x8x8xf32>
    %162 = arith.subf %156, %161 : vector<2x8x8xf32>
    %163 = math.exp %162 : vector<2x8x8xf32>
    %cst_71 = arith.constant dense<0.000000e+00> : vector<2x8xf32>
    %164 = vector.multi_reduction <add>, %163, %cst_71 [2] : vector<2x8x8xf32> to vector<2x8xf32>
    %165 = vector.shape_cast %164 : vector<2x8xf32> to vector<2x8x1xf32>
    %166 = vector.broadcast %165 : vector<2x8x1xf32> to vector<2x8x8xf32>
    %167 = arith.divf %163, %166 : vector<2x8x8xf32>
    "tpu.trace_start"() <{level = 10 : i32, message = "bts,bsd->btd"}> : () -> ()
    %cst_72 = arith.constant dense<0.000000e+00> : vector<2x8x8xf32>
    %168 = tpu.matmul %167, %154, %cst_72 {dimension_numbers = #tpu.dot_dimension_numbers<[2], [1], [1], [2], [0, 0, 0, 1, 1, 2], [0], [0]>} : vector<2x8x8xf32>, vector<2x8x8xf32>, vector<2x8x8xf32> -> vector<2x8x8xf32>
    "tpu.trace_stop"() : () -> ()
    %169 = vector.shape_cast %168 : vector<2x8x8xf32> to vector<16x8xf32>
    %170 = vector.extract_strided_slice %150 {offsets = [0, 0], sizes = [8, 32], strides = [1, 1]} : vector<32x32xf32> to vector<8x32xf32>
    %cst_73 = arith.constant dense<0.000000e+00> : vector<16x32xf32>
    %171 = tpu.matmul %169, %170, %cst_73 {dimension_numbers = #tpu.dot_dimension_numbers<[1], [0], [0], [1], [0, 0, 1, 1], [], []>} : vector<16x8xf32>, vector<8x32xf32>, vector<16x32xf32> -> vector<16x32xf32>
    %172 = arith.addf %151, %171 : vector<16x32xf32>
    %173 = vector.extract_strided_slice %140 {offsets = [0, 0, 8], sizes = [2, 8, 8], strides = [1, 1, 1]} : vector<2x8x32xf32> to vector<2x8x8xf32>
    %174 = vector.extract_strided_slice %147 {offsets = [0, 0, 8], sizes = [2, 8, 8], strides = [1, 1, 1]} : vector<2x8x32xf32> to vector<2x8x8xf32>
    %175 = vector.extract_strided_slice %149 {offsets = [0, 0, 8], sizes = [2, 8, 8], strides = [1, 1, 1]} : vector<2x8x32xf32> to vector<2x8x8xf32>
    "tpu.trace_start"() <{level = 10 : i32, message = "btd,bsd->bts"}> : () -> ()
    %cst_74 = arith.constant dense<0.000000e+00> : vector<2x8x8xf32>
    %176 = tpu.matmul %173, %174, %cst_74 {dimension_numbers = #tpu.dot_dimension_numbers<[2], [2], [1], [1], [0, 0, 0, 1, 1, 1], [0], [0]>} : vector<2x8x8xf32>, vector<2x8x8xf32>, vector<2x8x8xf32> -> vector<2x8x8xf32>
    "tpu.trace_stop"() : () -> ()
    %177 = arith.addf %176, %5 : vector<2x8x8xf32>
    %cst_75 = arith.constant dense<0xFF800000> : vector<2x8xf32>
    %178 = vector.multi_reduction <maximumf>, %177, %cst_75 [2] : vector<2x8x8xf32> to vector<2x8xf32>
    %cst_76 = arith.constant 0xFF800000 : f32
    %179 = vector.broadcast %cst_76 : f32 to vector<2x8xf32>
    %180 = arith.maximumf %179, %178 : vector<2x8xf32>
    %181 = vector.shape_cast %180 : vector<2x8xf32> to vector<2x8x1xf32>
    %182 = vector.broadcast %181 : vector<2x8x1xf32> to vector<2x8x8xf32>
    %183 = arith.subf %177, %182 : vector<2x8x8xf32>
    %184 = math.exp %183 : vector<2x8x8xf32>
    %cst_77 = arith.constant dense<0.000000e+00> : vector<2x8xf32>
    %185 = vector.multi_reduction <add>, %184, %cst_77 [2] : vector<2x8x8xf32> to vector<2x8xf32>
    %186 = vector.shape_cast %185 : vector<2x8xf32> to vector<2x8x1xf32>
    %187 = vector.broadcast %186 : vector<2x8x1xf32> to vector<2x8x8xf32>
    %188 = arith.divf %184, %187 : vector<2x8x8xf32>
    "tpu.trace_start"() <{level = 10 : i32, message = "bts,bsd->btd"}> : () -> ()
    %cst_78 = arith.constant dense<0.000000e+00> : vector<2x8x8xf32>
    %189 = tpu.matmul %188, %175, %cst_78 {dimension_numbers = #tpu.dot_dimension_numbers<[2], [1], [1], [2], [0, 0, 0, 1, 1, 2], [0], [0]>} : vector<2x8x8xf32>, vector<2x8x8xf32>, vector<2x8x8xf32> -> vector<2x8x8xf32>
    "tpu.trace_stop"() : () -> ()
    %190 = vector.shape_cast %189 : vector<2x8x8xf32> to vector<16x8xf32>
    %191 = vector.extract_strided_slice %150 {offsets = [8, 0], sizes = [8, 32], strides = [1, 1]} : vector<32x32xf32> to vector<8x32xf32>
    %cst_79 = arith.constant dense<0.000000e+00> : vector<16x32xf32>
    %192 = tpu.matmul %190, %191, %cst_79 {dimension_numbers = #tpu.dot_dimension_numbers<[1], [0], [0], [1], [0, 0, 1, 1], [], []>} : vector<16x8xf32>, vector<8x32xf32>, vector<16x32xf32> -> vector<16x32xf32>
    %193 = arith.addf %172, %192 : vector<16x32xf32>
    %194 = vector.extract_strided_slice %140 {offsets = [0, 0, 16], sizes = [2, 8, 8], strides = [1, 1, 1]} : vector<2x8x32xf32> to vector<2x8x8xf32>
    %195 = vector.extract_strided_slice %147 {offsets = [0, 0, 16], sizes = [2, 8, 8], strides = [1, 1, 1]} : vector<2x8x32xf32> to vector<2x8x8xf32>
    %196 = vector.extract_strided_slice %149 {offsets = [0, 0, 16], sizes = [2, 8, 8], strides = [1, 1, 1]} : vector<2x8x32xf32> to vector<2x8x8xf32>
    "tpu.trace_start"() <{level = 10 : i32, message = "btd,bsd->bts"}> : () -> ()
    %cst_80 = arith.constant dense<0.000000e+00> : vector<2x8x8xf32>
    %197 = tpu.matmul %194, %195, %cst_80 {dimension_numbers = #tpu.dot_dimension_numbers<[2], [2], [1], [1], [0, 0, 0, 1, 1, 1], [0], [0]>} : vector<2x8x8xf32>, vector<2x8x8xf32>, vector<2x8x8xf32> -> vector<2x8x8xf32>
    "tpu.trace_stop"() : () -> ()
    %198 = arith.addf %197, %5 : vector<2x8x8xf32>
    %cst_81 = arith.constant dense<0xFF800000> : vector<2x8xf32>
    %199 = vector.multi_reduction <maximumf>, %198, %cst_81 [2] : vector<2x8x8xf32> to vector<2x8xf32>
    %cst_82 = arith.constant 0xFF800000 : f32
    %200 = vector.broadcast %cst_82 : f32 to vector<2x8xf32>
    %201 = arith.maximumf %200, %199 : vector<2x8xf32>
    %202 = vector.shape_cast %201 : vector<2x8xf32> to vector<2x8x1xf32>
    %203 = vector.broadcast %202 : vector<2x8x1xf32> to vector<2x8x8xf32>
    %204 = arith.subf %198, %203 : vector<2x8x8xf32>
    %205 = math.exp %204 : vector<2x8x8xf32>
    %cst_83 = arith.constant dense<0.000000e+00> : vector<2x8xf32>
    %206 = vector.multi_reduction <add>, %205, %cst_83 [2] : vector<2x8x8xf32> to vector<2x8xf32>
    %207 = vector.shape_cast %206 : vector<2x8xf32> to vector<2x8x1xf32>
    %208 = vector.broadcast %207 : vector<2x8x1xf32> to vector<2x8x8xf32>
    %209 = arith.divf %205, %208 : vector<2x8x8xf32>
    "tpu.trace_start"() <{level = 10 : i32, message = "bts,bsd->btd"}> : () -> ()
    %cst_84 = arith.constant dense<0.000000e+00> : vector<2x8x8xf32>
    %210 = tpu.matmul %209, %196, %cst_84 {dimension_numbers = #tpu.dot_dimension_numbers<[2], [1], [1], [2], [0, 0, 0, 1, 1, 2], [0], [0]>} : vector<2x8x8xf32>, vector<2x8x8xf32>, vector<2x8x8xf32> -> vector<2x8x8xf32>
    "tpu.trace_stop"() : () -> ()
    %211 = vector.shape_cast %210 : vector<2x8x8xf32> to vector<16x8xf32>
    %212 = vector.extract_strided_slice %150 {offsets = [16, 0], sizes = [8, 32], strides = [1, 1]} : vector<32x32xf32> to vector<8x32xf32>
    %cst_85 = arith.constant dense<0.000000e+00> : vector<16x32xf32>
    %213 = tpu.matmul %211, %212, %cst_85 {dimension_numbers = #tpu.dot_dimension_numbers<[1], [0], [0], [1], [0, 0, 1, 1], [], []>} : vector<16x8xf32>, vector<8x32xf32>, vector<16x32xf32> -> vector<16x32xf32>
    %214 = arith.addf %193, %213 : vector<16x32xf32>
    %215 = vector.extract_strided_slice %140 {offsets = [0, 0, 24], sizes = [2, 8, 8], strides = [1, 1, 1]} : vector<2x8x32xf32> to vector<2x8x8xf32>
    %216 = vector.extract_strided_slice %147 {offsets = [0, 0, 24], sizes = [2, 8, 8], strides = [1, 1, 1]} : vector<2x8x32xf32> to vector<2x8x8xf32>
    %217 = vector.extract_strided_slice %149 {offsets = [0, 0, 24], sizes = [2, 8, 8], strides = [1, 1, 1]} : vector<2x8x32xf32> to vector<2x8x8xf32>
    "tpu.trace_start"() <{level = 10 : i32, message = "btd,bsd->bts"}> : () -> ()
    %cst_86 = arith.constant dense<0.000000e+00> : vector<2x8x8xf32>
    %218 = tpu.matmul %215, %216, %cst_86 {dimension_numbers = #tpu.dot_dimension_numbers<[2], [2], [1], [1], [0, 0, 0, 1, 1, 1], [0], [0]>} : vector<2x8x8xf32>, vector<2x8x8xf32>, vector<2x8x8xf32> -> vector<2x8x8xf32>
    "tpu.trace_stop"() : () -> ()
    %219 = arith.addf %218, %5 : vector<2x8x8xf32>
    %cst_87 = arith.constant dense<0xFF800000> : vector<2x8xf32>
    %220 = vector.multi_reduction <maximumf>, %219, %cst_87 [2] : vector<2x8x8xf32> to vector<2x8xf32>
    %cst_88 = arith.constant 0xFF800000 : f32
    %221 = vector.broadcast %cst_88 : f32 to vector<2x8xf32>
    %222 = arith.maximumf %221, %220 : vector<2x8xf32>
    %223 = vector.shape_cast %222 : vector<2x8xf32> to vector<2x8x1xf32>
    %224 = vector.broadcast %223 : vector<2x8x1xf32> to vector<2x8x8xf32>
    %225 = arith.subf %219, %224 : vector<2x8x8xf32>
    %226 = math.exp %225 : vector<2x8x8xf32>
    %cst_89 = arith.constant dense<0.000000e+00> : vector<2x8xf32>
    %227 = vector.multi_reduction <add>, %226, %cst_89 [2] : vector<2x8x8xf32> to vector<2x8xf32>
    %228 = vector.shape_cast %227 : vector<2x8xf32> to vector<2x8x1xf32>
    %229 = vector.broadcast %228 : vector<2x8x1xf32> to vector<2x8x8xf32>
    %230 = arith.divf %226, %229 : vector<2x8x8xf32>
    "tpu.trace_start"() <{level = 10 : i32, message = "bts,bsd->btd"}> : () -> ()
    %cst_90 = arith.constant dense<0.000000e+00> : vector<2x8x8xf32>
    %231 = tpu.matmul %230, %217, %cst_90 {dimension_numbers = #tpu.dot_dimension_numbers<[2], [1], [1], [2], [0, 0, 0, 1, 1, 2], [0], [0]>} : vector<2x8x8xf32>, vector<2x8x8xf32>, vector<2x8x8xf32> -> vector<2x8x8xf32>
    "tpu.trace_stop"() : () -> ()
    %232 = vector.shape_cast %231 : vector<2x8x8xf32> to vector<16x8xf32>
    %233 = vector.extract_strided_slice %150 {offsets = [24, 0], sizes = [8, 32], strides = [1, 1]} : vector<32x32xf32> to vector<8x32xf32>
    %cst_91 = arith.constant dense<0.000000e+00> : vector<16x32xf32>
    %234 = tpu.matmul %232, %233, %cst_91 {dimension_numbers = #tpu.dot_dimension_numbers<[1], [0], [0], [1], [0, 0, 1, 1], [], []>} : vector<16x8xf32>, vector<8x32xf32>, vector<16x32xf32> -> vector<16x32xf32>
    %235 = arith.addf %214, %234 : vector<16x32xf32>
    %c0_92 = arith.constant 0 : index
    %c0_93 = arith.constant 0 : index
    %236 = vector.load %arg16[%c0_92, %c0_93] : memref<1x32xf32, #tpu.memory_space<vmem>>, vector<1x32xf32>
    %237 = vector.broadcast %236 : vector<1x32xf32> to vector<16x32xf32>
    %238 = arith.addf %235, %237 : vector<16x32xf32>
    %239 = arith.addf %132, %238 : vector<16x32xf32>
    %cst_94 = arith.constant dense<0.000000e+00> : vector<16xf32>
    %240 = vector.multi_reduction <add>, %239, %cst_94 [1] : vector<16x32xf32> to vector<16xf32>
    %241 = vector.shape_cast %240 : vector<16xf32> to vector<16x1xf32>
    %cst_95 = arith.constant 3.200000e+01 : f32
    %242 = vector.broadcast %cst_95 : f32 to vector<16x1xf32>
    %243 = arith.divf %241, %242 : vector<16x1xf32>
    %244 = vector.broadcast %243 : vector<16x1xf32> to vector<16x32xf32>
    %245 = arith.subf %239, %244 : vector<16x32xf32>
    %246 = arith.mulf %245, %245 : vector<16x32xf32>
    %cst_96 = arith.constant dense<0.000000e+00> : vector<16xf32>
    %247 = vector.multi_reduction <add>, %246, %cst_96 [1] : vector<16x32xf32> to vector<16xf32>
    %248 = vector.shape_cast %247 : vector<16xf32> to vector<16x1xf32>
    %cst_97 = arith.constant 3.200000e+01 : f32
    %249 = vector.broadcast %cst_97 : f32 to vector<16x1xf32>
    %250 = arith.divf %248, %249 : vector<16x1xf32>
    %c0_98 = arith.constant 0 : index
    %c0_99 = arith.constant 0 : index
    %251 = vector.load %arg17[%c0_98, %c0_99] : memref<1x32xf32, #tpu.memory_space<vmem>>, vector<1x32xf32>
    %252 = vector.broadcast %243 : vector<16x1xf32> to vector<16x32xf32>
    %253 = arith.subf %239, %252 : vector<16x32xf32>
    %254 = vector.broadcast %251 : vector<1x32xf32> to vector<16x32xf32>
    %255 = arith.mulf %254, %253 : vector<16x32xf32>
    %cst_100 = arith.constant 9.99999974E-6 : f32
    %256 = vector.broadcast %cst_100 : f32 to vector<16x1xf32>
    %257 = arith.addf %250, %256 : vector<16x1xf32>
    %258 = math.rsqrt %257 : vector<16x1xf32>
    %259 = vector.broadcast %258 : vector<16x1xf32> to vector<16x32xf32>
    %260 = arith.mulf %255, %259 : vector<16x32xf32>
    %c0_101 = arith.constant 0 : index
    %c0_102 = arith.constant 0 : index
    %261 = vector.load %arg18[%c0_101, %c0_102] : memref<1x32xf32, #tpu.memory_space<vmem>>, vector<1x32xf32>
    %262 = vector.broadcast %261 : vector<1x32xf32> to vector<16x32xf32>
    %263 = arith.addf %260, %262 : vector<16x32xf32>
    %c0_103 = arith.constant 0 : index
    %c0_104 = arith.constant 0 : index
    %264 = vector.load %arg19[%c0_103, %c0_104] : memref<32x64xf32, #tpu.memory_space<vmem>>, vector<32x64xf32>
    %cst_105 = arith.constant dense<0.000000e+00> : vector<16x64xf32>
    %265 = tpu.matmul %263, %264, %cst_105 {dimension_numbers = #tpu.dot_dimension_numbers<[1], [0], [0], [1], [0, 0, 1, 1], [], []>} : vector<16x32xf32>, vector<32x64xf32>, vector<16x64xf32> -> vector<16x64xf32>
    %c0_106 = arith.constant 0 : index
    %c0_107 = arith.constant 0 : index
    %266 = vector.load %arg20[%c0_106, %c0_107] : memref<1x64xf32, #tpu.memory_space<vmem>>, vector<1x64xf32>
    %267 = vector.broadcast %266 : vector<1x64xf32> to vector<16x64xf32>
    %268 = arith.addf %265, %267 : vector<16x64xf32>
    %cst_108 = arith.constant 0.000000e+00 : f32
    %269 = vector.broadcast %cst_108 : f32 to vector<16x64xf32>
    %270 = arith.maximumf %268, %269 : vector<16x64xf32>
    %c0_109 = arith.constant 0 : index
    %c0_110 = arith.constant 0 : index
    %271 = vector.load %arg21[%c0_109, %c0_110] : memref<64x32xf32, #tpu.memory_space<vmem>>, vector<64x32xf32>
    %cst_111 = arith.constant dense<0.000000e+00> : vector<16x32xf32>
    %272 = tpu.matmul %270, %271, %cst_111 {dimension_numbers = #tpu.dot_dimension_numbers<[1], [0], [0], [1], [0, 0, 1, 1], [], []>} : vector<16x64xf32>, vector<64x32xf32>, vector<16x32xf32> -> vector<16x32xf32>
    %c0_112 = arith.constant 0 : index
    %c0_113 = arith.constant 0 : index
    %273 = vector.load %arg22[%c0_112, %c0_113] : memref<1x32xf32, #tpu.memory_space<vmem>>, vector<1x32xf32>
    %274 = vector.broadcast %273 : vector<1x32xf32> to vector<16x32xf32>
    %275 = arith.addf %272, %274 : vector<16x32xf32>
    %276 = arith.addf %263, %275 : vector<16x32xf32>
    %cst_114 = arith.constant dense<0.000000e+00> : vector<16xf32>
    %277 = vector.multi_reduction <add>, %276, %cst_114 [1] : vector<16x32xf32> to vector<16xf32>
    %278 = vector.shape_cast %277 : vector<16xf32> to vector<16x1xf32>
    %cst_115 = arith.constant 3.200000e+01 : f32
    %279 = vector.broadcast %cst_115 : f32 to vector<16x1xf32>
    %280 = arith.divf %278, %279 : vector<16x1xf32>
    %281 = vector.broadcast %280 : vector<16x1xf32> to vector<16x32xf32>
    %282 = arith.subf %276, %281 : vector<16x32xf32>
    %283 = arith.mulf %282, %282 : vector<16x32xf32>
    %cst_116 = arith.constant dense<0.000000e+00> : vector<16xf32>
    %284 = vector.multi_reduction <add>, %283, %cst_116 [1] : vector<16x32xf32> to vector<16xf32>
    %285 = vector.shape_cast %284 : vector<16xf32> to vector<16x1xf32>
    %cst_117 = arith.constant 3.200000e+01 : f32
    %286 = vector.broadcast %cst_117 : f32 to vector<16x1xf32>
    %287 = arith.divf %285, %286 : vector<16x1xf32>
    %c0_118 = arith.constant 0 : index
    %c0_119 = arith.constant 0 : index
    %288 = vector.load %arg23[%c0_118, %c0_119] : memref<1x32xf32, #tpu.memory_space<vmem>>, vector<1x32xf32>
    %289 = vector.broadcast %280 : vector<16x1xf32> to vector<16x32xf32>
    %290 = arith.subf %276, %289 : vector<16x32xf32>
    %291 = vector.broadcast %288 : vector<1x32xf32> to vector<16x32xf32>
    %292 = arith.mulf %291, %290 : vector<16x32xf32>
    %cst_120 = arith.constant 9.99999974E-6 : f32
    %293 = vector.broadcast %cst_120 : f32 to vector<16x1xf32>
    %294 = arith.addf %287, %293 : vector<16x1xf32>
    %295 = math.rsqrt %294 : vector<16x1xf32>
    %296 = vector.broadcast %295 : vector<16x1xf32> to vector<16x32xf32>
    %297 = arith.mulf %292, %296 : vector<16x32xf32>
    %c0_121 = arith.constant 0 : index
    %c0_122 = arith.constant 0 : index
    %298 = vector.load %arg24[%c0_121, %c0_122] : memref<1x32xf32, #tpu.memory_space<vmem>>, vector<1x32xf32>
    %299 = vector.broadcast %298 : vector<1x32xf32> to vector<16x32xf32>
    %300 = arith.addf %297, %299 : vector<16x32xf32>
    %301 = vector.shape_cast %300 : vector<16x32xf32> to vector<2x8x32xf32>
    %c0_123 = arith.constant 0 : index
    %c0_124 = arith.constant 0 : index
    %c0_125 = arith.constant 0 : index
    %302 = vector.load %arg25[%c0_123, %c0_124, %c0_125] : memref<2x8x32xf32, #tpu.memory_space<vmem>>, vector<2x8x32xf32>
    tpu.vector_store %arg25[%c0_123, %c0_124, %c0_125], %301 {strides = array<i32>} : memref<2x8x32xf32, #tpu.memory_space<vmem>>, vector<2x8x32xf32>,
    return
  }
  func.func @transform_0(%arg0: i32) -> (i32, i32, i32) {
    %c0_i32 = arith.constant 0 : i32
    %c0_i32_0 = arith.constant 0 : i32
    %c0_i32_1 = arith.constant 0 : i32
    return %arg0, %c0_i32, %c0_i32_0 : i32, i32, i32
  }
  func.func @transform_1(%arg0: i32) -> (i32, i32, i32) {
    %c0_i32 = arith.constant 0 : i32
    %c0_i32_0 = arith.constant 0 : i32
    %c0_i32_1 = arith.constant 0 : i32
    return %arg0, %c0_i32, %c0_i32_0 : i32, i32, i32
  }
  func.func @transform_2(%arg0: i32) -> (i32, i32, i32) {
    %c0_i32 = arith.constant 0 : i32
    %c0_i32_0 = arith.constant 0 : i32
    %c0_i32_1 = arith.constant 0 : i32
    return %arg0, %c0_i32, %c0_i32_0 : i32, i32, i32
  }
  func.func @transform_3(%arg0: i32) -> (i32, i32, i32) {
    %c0_i32 = arith.constant 0 : i32
    %c0_i32_0 = arith.constant 0 : i32
    %c0_i32_1 = arith.constant 0 : i32
    return %arg0, %c0_i32, %c0_i32_0 : i32, i32, i32
  }
  func.func @transform_4(%arg0: i32) -> (i32, i32) {
    %c0_i32 = arith.constant 0 : i32
    %c0_i32_0 = arith.constant 0 : i32
    %c0_i32_1 = arith.constant 0 : i32
    return %c0_i32, %c0_i32_0 : i32, i32
  }
  func.func @transform_5(%arg0: i32) -> (i32, i32) {
    %c0_i32 = arith.constant 0 : i32
    %c0_i32_0 = arith.constant 0 : i32
    %c0_i32_1 = arith.constant 0 : i32
    return %c0_i32, %c0_i32_0 : i32, i32
  }
  func.func @transform_6(%arg0: i32) -> (i32, i32) {
    %c0_i32 = arith.constant 0 : i32
    %c0_i32_0 = arith.constant 0 : i32
    %c0_i32_1 = arith.constant 0 : i32
    return %c0_i32, %c0_i32_0 : i32, i32
  }
  func.func @transform_7(%arg0: i32) -> (i32, i32) {
    %c0_i32 = arith.constant 0 : i32
    %c0_i32_0 = arith.constant 0 : i32
    %c0_i32_1 = arith.constant 0 : i32
    return %c0_i32, %c0_i32_0 : i32, i32
  }
  func.func @transform_8(%arg0: i32) -> (i32, i32) {
    %c0_i32 = arith.constant 0 : i32
    %c0_i32_0 = arith.constant 0 : i32
    %c0_i32_1 = arith.constant 0 : i32
    return %c0_i32, %c0_i32_0 : i32, i32
  }
  func.func @transform_9(%arg0: i32) -> (i32, i32) {
    %c0_i32 = arith.constant 0 : i32
    %c0_i32_0 = arith.constant 0 : i32
    %c0_i32_1 = arith.constant 0 : i32
    return %c0_i32, %c0_i32_0 : i32, i32
  }
  func.func @transform_10(%arg0: i32) -> (i32, i32) {
    %c0_i32 = arith.constant 0 : i32
    %c0_i32_0 = arith.constant 0 : i32
    %c0_i32_1 = arith.constant 0 : i32
    return %c0_i32, %c0_i32_0 : i32, i32
  }
  func.func @transform_11(%arg0: i32) -> (i32, i32) {
    %c0_i32 = arith.constant 0 : i32
    %c0_i32_0 = arith.constant 0 : i32
    %c0_i32_1 = arith.constant 0 : i32
    return %c0_i32, %c0_i32_0 : i32, i32
  }
  func.func @transform_12(%arg0: i32) -> (i32, i32) {
    %c0_i32 = arith.constant 0 : i32
    %c0_i32_0 = arith.constant 0 : i32
    %c0_i32_1 = arith.constant 0 : i32
    return %c0_i32, %c0_i32_0 : i32, i32
  }
  func.func @transform_13(%arg0: i32) -> (i32, i32) {
    %c0_i32 = arith.constant 0 : i32
    %c0_i32_0 = arith.constant 0 : i32
    %c0_i32_1 = arith.constant 0 : i32
    return %c0_i32, %c0_i32_0 : i32, i32
  }
  func.func @transform_14(%arg0: i32) -> (i32, i32) {
    %c0_i32 = arith.constant 0 : i32
    %c0_i32_0 = arith.constant 0 : i32
    %c0_i32_1 = arith.constant 0 : i32
    return %c0_i32, %c0_i32_0 : i32, i32
  }
  func.func @transform_15(%arg0: i32) -> (i32, i32) {
    %c0_i32 = arith.constant 0 : i32
    %c0_i32_0 = arith.constant 0 : i32
    %c0_i32_1 = arith.constant 0 : i32
    return %c0_i32, %c0_i32_0 : i32, i32
  }
  func.func @transform_16(%arg0: i32) -> (i32, i32) {
    %c0_i32 = arith.constant 0 : i32
    %c0_i32_0 = arith.constant 0 : i32
    %c0_i32_1 = arith.constant 0 : i32
    return %c0_i32, %c0_i32_0 : i32, i32
  }
  func.func @transform_17(%arg0: i32) -> (i32, i32) {
    %c0_i32 = arith.constant 0 : i32
    %c0_i32_0 = arith.constant 0 : i32
    %c0_i32_1 = arith.constant 0 : i32
    return %c0_i32, %c0_i32_0 : i32, i32
  }
  func.func @transform_18(%arg0: i32) -> (i32, i32) {
    %c0_i32 = arith.constant 0 : i32
    %c0_i32_0 = arith.constant 0 : i32
    %c0_i32_1 = arith.constant 0 : i32
    return %c0_i32, %c0_i32_0 : i32, i32
  }
  func.func @transform_19(%arg0: i32) -> (i32, i32) {
    %c0_i32 = arith.constant 0 : i32
    %c0_i32_0 = arith.constant 0 : i32
    %c0_i32_1 = arith.constant 0 : i32
    return %c0_i32, %c0_i32_0 : i32, i32
  }
  func.func @transform_20(%arg0: i32) -> (i32, i32) {
    %c0_i32 = arith.constant 0 : i32
    %c0_i32_0 = arith.constant 0 : i32
    %c0_i32_1 = arith.constant 0 : i32
    return %c0_i32, %c0_i32_0 : i32, i32
  }
  func.func @transform_21(%arg0: i32) -> (i32, i32) {
    %c0_i32 = arith.constant 0 : i32
    %c0_i32_0 = arith.constant 0 : i32
    %c0_i32_1 = arith.constant 0 : i32
    return %c0_i32, %c0_i32_0 : i32, i32
  }
  func.func @transform_22(%arg0: i32) -> (i32, i32) {
    %c0_i32 = arith.constant 0 : i32
    %c0_i32_0 = arith.constant 0 : i32
    %c0_i32_1 = arith.constant 0 : i32
    return %c0_i32, %c0_i32_0 : i32, i32
  }
  func.func @transform_23(%arg0: i32) -> (i32, i32) {
    %c0_i32 = arith.constant 0 : i32
    %c0_i32_0 = arith.constant 0 : i32
    %c0_i32_1 = arith.constant 0 : i32
    return %c0_i32, %c0_i32_0 : i32, i32
  }
  func.func @transform_24(%arg0: i32) -> (i32, i32, i32) {
    %c0_i32 = arith.constant 0 : i32
    %c0_i32_0 = arith.constant 0 : i32
    %c0_i32_1 = arith.constant 0 : i32
    return %arg0, %c0_i32, %c0_i32_0 : i32, i32, i32
  }
}

</mosaic_0001>

<bundles_post_ra>
// kernel: tpu_custom_call.1
= control target key start
LH: loop header
LB: loop body
LE: loop exit
PB: predicated region body
PF: predicated region fallthrough
CT: control target
= control target key end

     0   :  { %s4383_s0 = inlined_call_operand.vmem [shape: f32[4,8,32], index: 0, kind: input, shape index: {}]   ;;  %s4384_s1 = inlined_call_operand.vmem [shape: f32[4,8,32], index: 1, kind: input, shape index: {}]   ;;  %s4385_s2 = inlined_call_operand.vmem [shape: f32[4,8,8], index: 2, kind: input, shape index: {}]   ;;  %s4386_s3 = inlined_call_operand.hbm [shape: f32[4,8,8], index: 3, kind: input, shape index: {}]   ;;  %s4387_s4 = inlined_call_operand.hbm [shape: f32[32,96], index: 4, kind: input, shape index: {}]   ;;  %s4388_s5 = inlined_call_operand.vmem [shape: f32[1,96], index: 5, kind: input, shape index: {}]   ;;  %s4389_s6 = inlined_call_operand.hbm [shape: f32[32,32], index: 6, kind: input, shape index: {}]   ;;  %s4390_s7 = inlined_call_operand.vmem [shape: f32[1,32], index: 7, kind: input, shape index: {}]   ;;  %s4391_s8 = inlined_call_operand.vmem [shape: f32[1,32], index: 8, kind: input, shape index: {}]   ;;  %s4392_s9 = inlined_call_operand.vmem [shape: f32[1,32], index: 9, kind: input, shape index: {}]   ;;  %s4393_s10 = inlined_call_operand.hbm [shape: f32[32,32], index: 10, kind: input, shape index: {}]   ;;  %s4394_s11 = inlined_call_operand.vmem [shape: f32[1,32], index: 11, kind: input, shape index: {}]   ;;  %s4395_s12 = inlined_call_operand.hbm [shape: f32[32,64], index: 12, kind: input, shape index: {}]   ;;  %s4396_s13 = inlined_call_operand.vmem [shape: f32[1,64], index: 13, kind: input, shape index: {}]   ;;  %s4397_s14 = inlined_call_operand.hbm [shape: f32[32,32], index: 14, kind: input, shape index: {}]   ;;  %s4398_s15 = inlined_call_operand.vmem [shape: f32[1,32], index: 15, kind: input, shape index: {}]   ;;  %s4399_s16 = inlined_call_operand.vmem [shape: f32[1,32], index: 16, kind: input, shape index: {}]   ;;  %s4400_s17 = inlined_call_operand.vmem [shape: f32[1,32], index: 17, kind: input, shape index: {}]   ;;  %s4401_s18 = inlined_call_operand.hbm [shape: f32[32,64], index: 18, kind: input, shape index: {}]   ;;  %s4402_s19 = inlined_call_operand.vmem [shape: f32[1,64], index: 19, kind: input, shape index: {}]   ;;  %s4403_s20 = inlined_call_operand.vmem [shape: f32[64,32], index: 20, kind: input, shape index: {}]   ;;  %s4404_s21 = inlined_call_operand.vmem [shape: f32[1,32], index: 21, kind: input, shape index: {}]   ;;  %s4405_s22 = inlined_call_operand.vmem [shape: f32[1,32], index: 22, kind: input, shape index: {}]   ;;  %s4406_s23 = inlined_call_operand.vmem [shape: f32[1,32], index: 23, kind: input, shape index: {}]   ;;  %s4407_s24 = inlined_call_operand.hbm [shape: f32[4,8,32], index: 24, kind: output, shape index: {}]  }
   0x1   :  { %4415 = sst [smem:[#allocation23_spill]] %s4383_s0 }
   0x2   :  { %4416 = sst [smem:[#allocation24_spill]] %s4384_s1 }
   0x3   :  { %4417 = sst [smem:[#allocation25_spill]] %s4385_s2 }
   0x4   :  { %4418 = sst [smem:[#allocation26_spill]] %s4386_s3 }
   0x5   :  { %4419 = sst [smem:[#allocation27_spill]] %s4387_s4 }
   0x6   :  { %4420 = sst [smem:[#allocation28_spill]] %s4388_s5 }
   0x7   :  { %4421 = sst [smem:[#allocation29_spill]] %s4389_s6 }
   0x8   :  { %4422 = sst [smem:[#allocation30_spill]] %s4390_s7 }
   0x9   :  { %4423 = sst [smem:[#allocation31_spill]] %s4391_s8 }
   0xa   :  { %4424 = sst [smem:[#allocation32_spill]] %s4393_s10 }
   0xb   :  { %4425 = sst [smem:[#allocation33_spill]] %s4395_s12 }
   0xc   :  { %4426 = sst [smem:[#allocation34_spill]] %s4397_s14 }
   0xd   :  { %4427 = sst [smem:[#allocation35_spill]] %s4401_s18 }
   0xe   :  { %4428 = sst [smem:[#allocation36_spill]] %s4404_s21 }
   0xf   :  { %4429 = sst [smem:[#allocation37_spill]] %s4405_s22 }
  0x10   :  { %4430 = sst [smem:[#allocation38_spill]] %s4406_s23 }
  0x11   :  { %4431 = sst [smem:[#allocation39_spill]] %s4407_s24 }
  0x12   :  { %29 = vsyncpa [#allocation3], 0 }
  0x13   :  { %31 = vsyncpa [#allocation3 + $0x1], 0 }
  0x14   :  { %32 = vsyncpa [#allocation6], 0 }
  0x15   :  { %33 = vsyncpa [#allocation9], 0 }
  0x16   :  { %34 = vsyncpa [#allocation12], 0 }
  0x17   :  { %35 = vsyncpa [#allocation4], 0 }
  0x18   :  { %37 = vsyncpa [#allocation4 + $0x1], 0  ;;  %s3759_s5 = smov 0   ;;  %s3761_s26 = smov 0  }
  0x19   :  { %s3763_s27 = smov 0   ;;  %s3765_s28 = smov 0  }
  0x1a LB: > { %4432 = sst [smem:[#allocation20_spill]] %s3606_s27  ;;  %s3783_s7 = sadd.s32 4294967295, %s3610_s28   ;;  %s3610_s28 = sphi %s3765_s28, %s4462_s28   ;;  %s3606_s27 = sphi %s3763_s27, %s4464_s27   ;;  %s3602_s26 = sphi %s3761_s26, %s4466_s26   ;;  %s3598_s5 = sphi %s3759_s5, %s4465_s5  }
  0x1b   : > { %s4433_s29 = sld [smem:[#allocation27_spill]]  ;;  %p3001_p0 = scmp.ge.s32.totalorder %s3610_s28, 1 }
  0x1c   : > { %p142_p1 = scmp.eq.s32.totalorder %s3783_s7, 0  ;;  %p598_p2 = scmp.lt.s32.totalorder %s3610_s28, 3 }
  0x1d   : > { %s3612_s3 = smov [#allocation5]   ;;  %s4435_s10 = sld [smem:[#allocation32_spill]] }
  0x1e   : > { %p3788_p3 = pnand %p3001_p0, %p598_p2  ;;  %s611_s25 = sshll.u32 %s3612_s3, 4  ;;  %s612_s25 = int_to_ptr.vmem [resolvable:$true] %s611_s25 }
  0x1f   : > { %s4437_s14 = sld [smem:[#allocation34_spill]]  ;;  %s3613_s24 = smov [#allocation8]  }
  0x20   : > { %p3136_p4 = pneg %p3788_p3  ;;  %s651_s23 = sshll.u32 %s3613_s24, 4  ;;  %s652_s23 = int_to_ptr.vmem [resolvable:$true] %s651_s23 }
  0x21   : > { %s609_s0 = sshll.u32 %s4433_s29, 4  ;;  %s4410_s22 = smov 128   ;;  %s610_s0 = int_to_ptr.hbm [resolvable:$true] %s609_s0 }
  0x22   : > { %p3800_p6 = pnand %p3136_p4, %p142_p1  ;;  %s4411_s21 = smov 8  }
  0x23   : > { %s649_s1 = sshll.u32 %s4435_s10, 4  ;;  %s4438_s2 = sld [smem:[#allocation29_spill]]  ;;  %s650_s1 = int_to_ptr.hbm [resolvable:$true] %s649_s1 }
  0x24   : > { %3139 = dma.hbm_to_vmem [thread:$0]  (!%p3800_p6), %s610_s0, 512, %s612_s25, [#allocation6], %s4410_s22, %s4410_s22, %s4411_s21  }
  0x25   : > { %s683_s3 = sshll.u32 %s4437_s14, 4  ;;  %s3616_s24 = smov [#allocation11]   ;;  %s684_s3 = int_to_ptr.hbm [resolvable:$true] %s683_s3 }
  0x26   : > { %3145 = dma.hbm_to_vmem [thread:$0]  (!%p3800_p6), %s650_s1, 512, %s652_s23, [#allocation9], %s4410_s22, %s4410_s22, %s4411_s21  }
  0x27   : > { %s685_s10 = sshll.u32 %s3616_s24, 4  ;;  %s3617_s0 = smov [#allocation7]   ;;  %s686_s10 = int_to_ptr.vmem [resolvable:$true] %s685_s10 }
  0x28   : > { %3151 = dma.hbm_to_vmem [thread:$0]  (!%p3800_p6), %s684_s3, 512, %s686_s10, [#allocation12], %s4410_s22, %s4410_s22, %s4411_s21  }
  0x29   : > { %s626_s29 = sshll.u32 %s4438_s2, 4  ;;  %s628_s25 = sshll.u32 %s3617_s0, 4  ;;  %s627_s29 = int_to_ptr.hbm [resolvable:$true] %s626_s29  ;;  %s629_s25 = int_to_ptr.vmem [resolvable:$true] %s628_s25 }
  0x2a   : > { %s4439_s12 = sld [smem:[#allocation33_spill]]  ;;  %s3618_s4 = smov [#allocation10]  }
  0x2b   : > { %3142 = dma.hbm_to_vmem [thread:$0]  (!%p3800_p6), %s627_s29, 512, %s629_s25, [#allocation6], %s4410_s22, %s4410_s22, %s4411_s21  }
  0x2c   : > { %s4440_s18 = sld [smem:[#allocation35_spill]]  ;;  %s668_s14 = sshll.u32 %s3618_s4, 4  ;;  %s669_s14 = int_to_ptr.vmem [resolvable:$true] %s668_s14 }
  0x2d   : > { %s3619_s2 = smov [#allocation13]   ;;  %s3000_s24 = sadd.s32 4294967294, %s3610_s28  }
  0x2e   : > { %s708_s29 = sshll.u32 %s3619_s2, 4  ;;  %s3848_s0 = sadd.s32 1, %s3610_s28   ;;  %s709_s29 = int_to_ptr.vmem [resolvable:$true] %s708_s29 }
  0x2f   : > { %4441 = sst [smem:[#allocation21_spill]] %s3848_s0  ;;  %s125_s25 = ssub.s32 %s3610_s28, %s3848_s0 }
  0x30   : > { %s666_s1 = sshll.u32 %s4439_s12, 4  ;;  %s128_s23 = sadd.s32 1, %s3606_s27  ;;  %s667_s1 = int_to_ptr.hbm [resolvable:$true] %s666_s1 }
  0x31   : > { %3148 = dma.hbm_to_vmem [thread:$0]  (!%p3800_p6), %s667_s1, 512, %s669_s14, [#allocation9], %s4410_s22, %s4410_s22, %s4411_s21  }
  0x32   : > { %s706_s3 = sshll.u32 %s4440_s18, 4  ;;  %p126_p7 = scmp.eq.s32.totalorder %s125_s25, 0  ;;  %s707_s3 = int_to_ptr.hbm [resolvable:$true] %s706_s3 }
  0x33   : > { %3154 = dma.hbm_to_vmem [thread:$0]  (!%p3800_p6), %s707_s3, 512, %s709_s29, [#allocation12], %s4410_s22, %s4410_s22, %s4411_s21  }
  0x34   : > { %p135_p8 = scmp.ne.s32.totalorder %s3606_s27, %s3602_s26  ;;  %p136_p9 = scmp.eq.s32.totalorder %s3610_s28, 0 }
  0x35   : > { %p141_p10 = scmp.ne.s32.totalorder %s3602_s26, %s3598_s5  ;;  %p585_p13 = scmp.eq.s32.totalorder %s3783_s7, 1 }
  0x36   : > { %s3859_s1 = scalar_select %p126_p7, %s3606_s27, %s128_s23  }
  0x37   : > { %p3861_p11 = por %p136_p9, %p135_p8  ;;  %p3867_p12 = por %p142_p1, %p141_p10 }
  0x38   : > { %4442 = sst [smem:[#allocation22_spill]] %s3859_s1  ;;  %p591_p0 = scmp.eq.s32.totalorder %s3000_s24, 1 }
  0x39   : > { %p3169_p2 = scmp.lt.s32.totalorder %s3610_s28, 2  ;;  %s764_s10 = sand.u32 1, %s3606_s27  }
  0x3a   : > { %p3874_p4 = por %p585_p13, %p135_p8  ;;  %p3878_p6 = por %p591_p0, %p141_p10 }
  0x3b   : > { %s3009_s14 = sshll.u32 %s764_s10, 4  ;;  %s3106_s2 = sshll.u32 %s3610_s28, 4 }
  0x3c   : > { %s4447_s23 = sld [smem:[#allocation26_spill]]  ;;  %s768_s21 = scalar_lea.vmem [#allocation2], %s3009_s14 }
  0x3d   : > { %s776_s12 = sshll.u32 %s768_s21, 4  ;;  %p3888_p7 = pnand %p3169_p2, %p3861_p11  ;;  %s777_s12 = int_to_ptr.vmem [resolvable:$true] %s776_s12 }
  0x3e   : > { %s765_s1 = scalar_lea.sflag [#allocation3], %s764_s10 }
  0x3f   : > { %p3506_p9 = pneg %p3888_p7 }
  0x42   : > { %s773_s22 = scalar_lea.hbm %s4447_s23, %s3106_s2 }
  0x43   : > { %s774_s18 = sshll.u32 %s773_s22, 4  ;;  %s3509_s22 = scalar_lea.hbm %s4447_s23, 32  ;;  %s775_s18 = int_to_ptr.hbm [resolvable:$true] %s774_s18 }
  0x44   : > { %s3502_s27 = sshra.s32 %s775_s18, 4  ;;  %s3503_s27 = int_to_ptr.hbm [resolvable:$true] %s3502_s27 }
  0x45   : > { %s3504_s0 = scalar_lea.hbm %s3503_s27, 16  ;;  %p3510_p11 = scmp.lt.s32.totalorder %s3503_s27, %s4447_s23 }
  0x46   : > { %p3505_p8 = scmp.ne.s32.totalorder %s3503_s27, %s3504_s0  ;;  %p3511_p0 = scmp.lt.s32.totalorder %s3509_s22, %s3504_s0 }
  0x48   : > { %p3507_p10 = pnand %p3506_p9, %p3505_p8  ;;  %p3512_p2 = por %p3511_p0, %p3510_p11 }
  0x4a   : > { %p3508_p13 = pneg %p3507_p10 }
  0x4c   : > { %p3513_p5 = pnand %p3512_p2, %p3508_p13 }
  0x4e   : > { %3516 = shalt.err (!%p3513_p5)
}
  0x4f   : > { %s4449_s10 = smov 8   ;;  %s4450_s29 = smov 128  }
  0x50   : > { %3158 = dma.hbm_to_vmem [thread:$0]  (!%p3888_p7), %s775_s18, 256, %s777_s12, %s765_s1, %s4450_s29, %s4450_s29, %s4449_s10  }
  0x51   : > { %788 = sbr.rel (%p3788_p3) target bundleno = 4374 (0x1116), region = 116  ;;  %s3908_s25 = sand.u32 (!%p3788_p3), 1, %s3602_s26  }
  0x52   : > { %s3013_s27 = sshll.u32 (!%p3788_p3), %s3908_s25, 4  ;;  %s791_s0 = scalar_lea.sflag (!%p3788_p3), [#allocation3], %s3908_s25 }
  0x53   : > { %s3914_s14 = scalar_lea.vmem (!%p3788_p3), [#allocation2], %s3013_s27 }
  0x56   : > { %3577 = dma.done.wait (%p3867_p12), %s791_s0, 256  }
  0x57   : > { %3579 = vsyncadd (%p3867_p12), %s791_s0, 4294967040 }
  0x58   : > { %3581 = dma.done.wait (%p142_p1), [#allocation6], 1024  }
  0x59   : > { %3583 = vsyncadd (%p142_p1), [#allocation6], 4294966272 }
  0x5a   : > { %3585 = dma.done.wait (%p142_p1), [#allocation9], 1024  }
  0x5b   : > { %3587 = vsyncadd (%p142_p1), [#allocation9], 4294966272 }
  0x5c   : > { %3589 = dma.done.wait (%p142_p1), [#allocation12], 1024  }
  0x5d   : > { %3591 = vsyncadd (%p142_p1), [#allocation12], 4294966272  ;;  %s3021_s12 = sshll.u32 %s3783_s7, 1  ;;  %v936_v0 = vld [vmem:[#allocation5 + $0x18] sm:$0xff]  ;;  %v935_v1 = vld [vmem:[#allocation5 + $0x10] sm:$0xff]  ;;  %s4451_s8 = sld [smem:[#allocation23_spill]] }
  0x5e   : > { %p906_p3 = scmp.lt.s32.totalorder %s3021_s12, 3  ;;  %960 = vmatpush.msra.mxu0 %v936_v0  ;;  %v934_v2 = vld [vmem:[#allocation5 + $0x8] sm:$0xff]  ;;  %v933_v3 = vld [vmem:[#allocation5] sm:$0xff]  ;;  %vm941_vm0 = vcmask 261120   ;;  %s4452_s2 = sld [smem:[#allocation28_spill]]  ;;  %vm980_vm1 = vcmask 64512  }
  0x5f   : > { %s3620_s6 = smov 88   ;;  %s3621_s10 = smov 96   ;;  %v973_v63 = vld [vmem:[#allocation7] sm:$0xff] }
  0x60   : > { %s4468_s12 = smov (!%p906_p3, %s3021_s12), 3  ;;  %961 = vmatpush.msra.mxu0 %v935_v1  ;;  %s3622_s29 = smov 120  }
  0x61   : > { %s3933_s18 = sshll.u32 %s4468_s12, 3  ;;  %s4453_s30 = sld [smem:[#allocation25_spill]] }
  0x62   : > { %962 = vmatpush.msra.mxu0 %v934_v2  ;;  %s3625_s21 = smov 112   ;;  %s3626_s22 = smov 56  }
  0x63   : > { %s909_s24 = scalar_lea.vmem %s4451_s8, %s3933_s18  ;;  %s3623_s8 = smov 64  }
  0x64   : > { %v3939_v4 = vld [vmem:[%s909_s24] sm:$0xff]  ;;  %963 = vmatpush.msra.mxu0 %v933_v3  ;;  %v3943_v5 = vld [vmem:[%s909_s24 + $0x8] sm:$0xff]  ;;  %s3624_s24 = smov 80   ;;  %s3628_s0 = smov 104  }
  0x65   : > { %3027 = vmatmul.msk.f32.vlgmr.msra.gmra.mxu0 %vm941_vm0, %v3939_v4  ;;  %v3231_v6 = vld [vmem:[%s4452_s2] ss:$0 sm:$0xff]  ;;  %s3627_s2 = smov 72   ;;  %s3629_s12 = smov 48  }
  0x67   : > { %s921_s1 = scalar_lea.vmem %s4453_s30, %s3933_s18  ;;  %s3630_s30 = smov 40  }
  0x68   : > { %v3986_v19 = vld [vmem:[%s921_s1] sm:$0xff]  ;;  %v3992_v26 = vld [vmem:[%s921_s1 + $0x8] sm:$0xff]  ;;  %s4455_s1 = sld [smem:[#allocation24_spill]] }
  0x6d   : > { %3028 = vmatmul.msk.f32.gmra.mxu0 %vm941_vm0, %v3943_v5 }
  0xe2   : > { %v965_v7 = vpop.f32.mrf.mxu0 }
  0xe3   : > { %v3950_v8 = vadd.f32 %v3231_v6, %v965_v7 }
  0xe5   : > { %1136 = vrot.lane.b32.xlu1 %v3950_v8, %s3620_s6  ;;  %978 = vrot.lane.b32.xlu0 %v3950_v8, %s3621_s10  ;;  %v3959_v11 = vmul.f32 0.35355338, %v3950_v8 }
  0xea   : > { %v968_v9 = vpop.f32.mrf.mxu0 }
  0xeb   : > { %v3956_v10 = vadd.f32 %v3231_v6, %v968_v9 }
  0xed   : > { %1164 = vrot.lane.b32.xlu2 %v3956_v10, %s3620_s6  ;;  %1007 = vrot.lane.b32.xlu0 %v3956_v10, %s3621_s10  ;;  %v3968_v12 = vmul.f32 0.35355338, %v3956_v10 }
  0xee   : > { %1134 = vrot.lane.b32.xlu1 %v3959_v11, %s3622_s29 }
  0xf5   : > { %1162 = vrot.lane.b32.xlu2 %v3968_v12, %s3622_s29 }
 0x147   : > { %v1165_v16 = vpop.permute.xlu2 %1164 }
 0x14f   : > { %v1163_v18 = vpop.permute.xlu2 %1162 }
 0x157   : > { %v1137_v13 = vpop.permute.xlu1 %1136  ;;  %v979_v14 = vpop.permute.xlu0 %978 }
 0x158   : > { %3029 = vmatpush.xpose.msk.msrb.mxu0 %vm980_vm1, %v979_v14  ;;  %3035 = vmatpush.xpose.msk.msra.mxu1 %vm980_vm1, %v1137_v13 }
 0x15b   : > { %3030 = vmatmul.msk.f32.vlgmr.msrb.gmra.mxu0 %vm980_vm1, %v3959_v11 }
 0x15c   : > { %1340 = vmatpush.msra.mxu0 %v973_v63 }
 0x15f   : > { %v1008_v15 = vpop.permute.xlu0 %1007 }
 0x160   : > { %v1135_v17 = vpop.permute.xlu1 %1134  ;;  %3031 = vmatpush.xpose.msk.msra.mxu2 %vm980_vm1, %v1008_v15 }
 0x161   : > { %3036 = vmatmul.msk.f32.vlgmr.msra.gmra.mxu1 %vm980_vm1, %v1135_v17 }
 0x163   : > { %3032 = vmatmul.msk.f32.vlgmr.msra.gmra.mxu2 %vm980_vm1, %v3968_v12 }
 0x164   : > { %3037 = vmatpush.xpose.msk.msrb.mxu2 %vm980_vm1, %v1165_v16 }
 0x16b   : > { %3038 = vmatmul.msk.f32.vlgmr.msrb.gmra.mxu2 %vm980_vm1, %v1163_v18 }
 0x1d8   : > { %v1003_v20 = vpop.f32.mrf.mxu0 }
 0x1d9   : > { %v1004_v21 = vadd.f32 %v1003_v20, %v3986_v19 }
 0x1db   : > { %v1034_v22 = vsel %vm980_vm1, %v1004_v21, -inf }
 0x1dc   : > { %1035 = vmax.xlane.f32.xlu0 %v1034_v22 }
 0x1de   : > { %v1159_v23 = vpop.f32.mrf.mxu1 }
 0x1df   : > { %v1160_v24 = vadd.f32 %v1159_v23, %v3986_v19 }
 0x1e1   : > { %v1190_v25 = vsel %vm980_vm1, %v1160_v24, -inf }
 0x1e2   : > { %1191 = vmax.xlane.f32.xlu2 %v1190_v25 }
 0x1e6   : > { %v1031_v27 = vpop.f32.mrf.mxu2 }
 0x1e7   : > { %v1032_v28 = vadd.f32 %v1031_v27, %v3992_v26 }
 0x1e9   : > { %v1037_v29 = vsel %vm980_vm1, %v1032_v28, -inf }
 0x1ea   : > { %1038 = vmax.xlane.f32.xlu1 %v1037_v29 }
 0x1ee   : > { %v1187_v30 = vpop.f32.mrf.mxu2 }
 0x1ef   : > { %v1188_v31 = vadd.f32 %v1187_v30, %v3992_v26 }
 0x1f1   : > { %v1193_v32 = vsel %vm980_vm1, %v1188_v31, -inf }
 0x203   : > { %1082 = vrot.lane.b32.xlu1 %v3950_v8, %s3623_s8 }
 0x20b   : > { %1350 = vrot.lane.b32.xlu1 %v3950_v8, %s3624_s24 }
 0x235   : > { %1194 = vmax.xlane.f32.xlu1 %v1193_v32 }
 0x24f   : > { %v1036_v33 = vpop.xlane.xlu0 %1035 }
 0x250   : > { %v1040_v34 = vsub.f32 %v1004_v21, %v1036_v33 }
 0x252   : > { %v1042_v35 = vmul.f32 1.442695, %v1040_v34 }
 0x254   : > { %3244 = vpow2.f32 %v1042_v35 }
 0x255   : > { %v1192_v38 = vpop.xlane.xlu2 %1191 }
 0x256   : > { %v1196_v41 = vsub.f32 %v1160_v24, %v1192_v38 }
 0x258   : > { %v1198_v43 = vmul.f32 1.442695, %v1196_v41 }
 0x25a   : > { %v4001_v36 = vpop.eup %3244 }
 0x25b   : > { %v1046_v37 = vsel %vm980_vm1, %v4001_v36, 0.0 }
 0x25c   : > { %1047 = vadd.xlane.f32.xlu2 %v1046_v37 }
 0x25d   : > { %v1039_v39 = vpop.xlane.xlu1 %1038 }
 0x25e   : > { %v1041_v40 = vsub.f32 %v1032_v28, %v1039_v39 }
 0x260   : > { %v1044_v42 = vmul.f32 1.442695, %v1041_v40 }
 0x262   : > { %3246 = vpow2.f32 %v1044_v42 }
 0x263   : > { %3248 = vpow2.f32 %v1198_v43 }
 0x268   : > { %v4005_v44 = vpop.eup %3246 }
 0x269   : > { %v1049_v45 = vsel %vm980_vm1, %v4005_v44, 0.0  ;;  %v4009_v46 = vpop.eup %3248 }
 0x26a   : > { %1050 = vadd.xlane.f32.xlu0 %v1049_v45  ;;  %v1202_v47 = vsel %vm980_vm1, %v4009_v46, 0.0 }
 0x272   : > { %1203 = vadd.xlane.f32.xlu0 %v1202_v47 }
 0x274   : > { %1108 = vrot.lane.b32.xlu2 %v3956_v10, %s3623_s8  ;;  %s4112_s8 = scalar_lea.vmem %s4455_s1, %s3933_s18  ;;  %s4460_s1 = sld [smem:[#allocation39_spill]] }
 0x275   : > { %v1083_v48 = vpop.permute.xlu1 %1082 }
 0x276   : > { %1103 = vmatpush.msra.mxu3 %v1083_v48 }
 0x27c   : > { %1348 = vrot.lane.b32.xlu2 %v3959_v11, %s3625_s21 }
 0x27d   : > { %v4024_v49 = vpop.permute.xlu1 %1350 }
 0x284   : > { %1264 = vrot.lane.b32.xlu2 %v3956_v10, %s3626_s22 }
 0x286   : > { %1238 = vrot.lane.b32.xlu0 %v3950_v8, %s3626_s22  ;;  %s4454_s22 = sld [smem:[#allocation30_spill]] }
 0x28c   : > { %1378 = vrot.lane.b32.xlu2 %v3956_v10, %s3624_s24 }
 0x294   : > { %1376 = vrot.lane.b32.xlu2 %v3968_v12, %s3625_s21 }
 0x29c   : > { %1537 = vrot.lane.b32.xlu2 %v3950_v8, %s3627_s2 }
 0x2a4   : > { %1535 = vrot.lane.b32.xlu2 %v3959_v11, %s3628_s0 }
 0x2a8   : > { %v1195_v50 = vpop.xlane.xlu1 %1194 }
 0x2a9   : > { %v1197_v51 = vsub.f32 %v1188_v31, %v1195_v50 }
 0x2ab   : > { %v1200_v52 = vmul.f32 1.442695, %v1197_v51 }
 0x2ac   : > { %1452 = vrot.lane.b32.xlu2 %v3950_v8, %s3629_s12 }
 0x2ad   : > { %3250 = vpow2.f32 %v1200_v52 }
 0x2b3   : > { %v4030_v53 = vpop.eup %3250 }
 0x2b4   : > { %1563 = vrot.lane.b32.xlu2 %v3968_v12, %s3628_s0  ;;  %v1205_v54 = vsel %vm980_vm1, %v4030_v53, 0.0 }
 0x2b5   : > { %1206 = vadd.xlane.f32.xlu0 %v1205_v54 }
 0x2cf   : > { %v1048_v55 = vpop.xlane.xlu2 %1047 }
 0x2d0   : > { %3252 = vrcp.f32 %v1048_v55  ;;  %v1063_v60 = vand.u32 2147483648, %v1048_v55  ;;  %v1061_v62 = vand.u32 2147483647, %v1048_v55  ;;  %vm1057_vm3 = vweird.f32 %v1048_v55 }
 0x2d2   : > { %v1064_v2 = vor.u32 1.1754944e-38, %v1063_v60  ;;  %vm1062_vm5 = vcmp.eq.f32.partialorder %v1061_v62, 8.507059e+37 }
 0x2d6   : > { %v3253_v56 = vpop.eup %3252 }
 0x2d7   : > { %v1053_v57 = vmul.f32 %v3253_v56, %v1048_v55  ;;  %v1109_v58 = vpop.permute.xlu2 %1108  ;;  %vm1058_vm2 = vweird.f32 %v3253_v56 }
 0x2d8   : > { %1129 = vmatpush.msrb.mxu3 %v1109_v58  ;;  %vm1059_vm4 = vmor %vm1057_vm3, %vm1058_vm2 }
 0x2d9   : > { %v1054_v59 = vsub.f32 1.0, %v1053_v57 }
 0x2db   : > { %v1055_v61 = vmul.f32 %v3253_v56, %v1054_v59 }
 0x2dd   : > { %v1051_v0 = vpop.xlane.xlu0 %1050  ;;  %v1056_v1 = vadd.f32 %v3253_v56, %v1055_v61 }
 0x2de   : > { %3254 = vrcp.f32 %v1051_v0  ;;  %v1078_v16 = vand.u32 2147483648, %v1051_v0  ;;  %v1076_v18 = vand.u32 2147483647, %v1051_v0  ;;  %vm1072_vm7 = vweird.f32 %v1051_v0 }
 0x2df   : > { %v1349_v3 = vpop.permute.xlu2 %1348  ;;  %v1060_v6 = vsel %vm1059_vm4, %v3253_v56, %v1056_v1  ;;  %v974_v56 = vld [vmem:[#allocation7 + $0x8] sm:$0xff] }
 0x2e0   : > { %v1065_v7 = vsel %vm1062_vm5, %v1064_v2, %v1060_v6  ;;  %v1079_v22 = vor.u32 1.1754944e-38, %v1078_v16  ;;  %vm1077_vm9 = vcmp.eq.f32.partialorder %v1076_v18, 8.507059e+37  ;;  %1311 = vmatpush.msra.mxu2 %v974_v56 }
 0x2e1   : > { %v1066_v9 = vmul.f32 %v4001_v36, %v1065_v7 }
 0x2e3   : > { %3033 = vmatmul.msk.f32.vlgmr.msra.gmra.mxu3 %vm980_vm1, %v1066_v9 }
 0x2e4   : > { %v3255_v11 = vpop.eup %3254 }
 0x2e5   : > { %v1068_v12 = vmul.f32 %v3255_v11, %v1051_v0  ;;  %v1204_v13 = vpop.xlane.xlu0 %1203  ;;  %vm1073_vm6 = vweird.f32 %v3255_v11 }
 0x2e6   : > { %3256 = vrcp.f32 %v1204_v13  ;;  %vm1074_vm8 = vmor %vm1072_vm7, %vm1073_vm6  ;;  %v1219_v30 = vand.u32 2147483648, %v1204_v13  ;;  %v1217_v32 = vand.u32 2147483647, %v1204_v13  ;;  %vm1213_vm11 = vweird.f32 %v1204_v13 }
 0x2e7   : > { %v1069_v14 = vsub.f32 1.0, %v1068_v12  ;;  %v1265_v15 = vpop.permute.xlu2 %1264 }
 0x2e8   : > { %1285 = vmatpush.msrb.mxu1 %v1265_v15  ;;  %v1220_v34 = vor.u32 1.1754944e-38, %v1219_v30  ;;  %vm1218_vm13 = vcmp.eq.f32.partialorder %v1217_v32, 8.507059e+37 }
 0x2e9   : > { %v1070_v17 = vmul.f32 %v3255_v11, %v1069_v14 }
 0x2eb   : > { %v1071_v20 = vadd.f32 %v3255_v11, %v1070_v17 }
 0x2ec   : > { %v3257_v21 = vpop.eup %3256 }
 0x2ed   : > { %v1209_v23 = vmul.f32 %v3257_v21, %v1204_v13  ;;  %v1075_v24 = vsel %vm1074_vm8, %v3255_v11, %v1071_v20  ;;  %vm1214_vm10 = vweird.f32 %v3257_v21 }
 0x2ee   : > { %v1080_v25 = vsel %vm1077_vm9, %v1079_v22, %v1075_v24  ;;  %vm1215_vm12 = vmor %vm1213_vm11, %vm1214_vm10 }
 0x2ef   : > { %v1210_v27 = vsub.f32 1.0, %v1209_v23  ;;  %v1379_v28 = vpop.permute.xlu2 %1378  ;;  %v1081_v29 = vmul.f32 %v4005_v44, %v1080_v25 }
 0x2f0   : > { %3047 = vmatpush.xpose.msk.msra.mxu1 %vm980_vm1, %v1379_v28 }
 0x2f1   : > { %v1211_v31 = vmul.f32 %v3257_v21, %v1210_v27  ;;  %3034 = vmatmul.msk.f32.vlgmr.msrb.gmra.mxu3 %vm980_vm1, %v1081_v29 }
 0x2f3   : > { %v1212_v33 = vadd.f32 %v3257_v21, %v1211_v31 }
 0x2f5   : > { %v1216_v35 = vsel %vm1215_vm12, %v3257_v21, %v1212_v33 }
 0x2f6   : > { %v1221_v36 = vsel %vm1218_vm13, %v1220_v34, %v1216_v35 }
 0x2f7   : > { %v1377_v37 = vpop.permute.xlu2 %1376  ;;  %v1222_v38 = vmul.f32 %v4009_v46, %v1221_v36 }
 0x2f8   : > { %v1239_v39 = vpop.permute.xlu0 %1238 }
 0x2f9   : > { %1259 = vmatpush.msra.mxu3 %v1239_v39 }
 0x2fa   : > { %3039 = vmatmul.msk.f32.vlgmr.msra.gmra.mxu3 %vm980_vm1, %v1222_v38 }
 0x2fb   : > { %3045 = vmatpush.xpose.msk.msrb.mxu3 %vm980_vm1, %v4024_v49 }
 0x2ff   : > { %v1538_v40 = vpop.permute.xlu2 %1537 }
 0x300   : > { %3053 = vmatpush.xpose.msk.msrb.mxu0 %vm980_vm1, %v1538_v40 }
 0x302   : > { %3046 = vmatmul.msk.f32.vlgmr.msrb.gmra.mxu3 %vm980_vm1, %v1349_v3 }
 0x307   : > { %v1536_v41 = vpop.permute.xlu2 %1535 }
 0x30f   : > { %v1453_v42 = vpop.permute.xlu2 %1452 }
 0x310   : > { %1473 = vmatpush.msra.mxu3 %v1453_v42 }
 0x317   : > { %v1564_v40 = vpop.permute.xlu2 %1563 }
 0x328   : > { %v1207_v43 = vpop.xlane.xlu0 %1206 }
 0x329   : > { %3258 = vrcp.f32 %v1207_v43  ;;  %v1234_v47 = vand.u32 2147483648, %v1207_v43  ;;  %v1232_v50 = vand.u32 2147483647, %v1207_v43  ;;  %vm1228_vm15 = vweird.f32 %v1207_v43 }
 0x32b   : > { %v1235_v49 = vor.u32 1.1754944e-38, %v1234_v47  ;;  %vm1233_vm3 = vcmp.eq.f32.partialorder %v1232_v50, 8.507059e+37 }
 0x32f   : > { %v3259_v44 = vpop.eup %3258 }
 0x330   : > { %v1224_v45 = vmul.f32 %v3259_v44, %v1207_v43  ;;  %vm1229_vm14 = vweird.f32 %v3259_v44 }
 0x331   : > { %vm1230_vm2 = vmor %vm1228_vm15, %vm1229_vm14 }
 0x332   : > { %v1225_v46 = vsub.f32 1.0, %v1224_v45 }
 0x334   : > { %v1226_v48 = vmul.f32 %v3259_v44, %v1225_v46 }
 0x336   : > { %v1227_v51 = vadd.f32 %v3259_v44, %v1226_v48 }
 0x338   : > { %v1231_v52 = vsel %vm1230_vm2, %v3259_v44, %v1227_v51 }
 0x339   : > { %v1236_v54 = vsel %vm1233_vm3, %v1235_v49, %v1231_v52 }
 0x33a   : > { %v1237_v55 = vmul.f32 %v4030_v53, %v1236_v54 }
 0x33c   : > { %3040 = vmatmul.msk.f32.vlgmr.msrb.gmra.mxu1 %vm980_vm1, %v1237_v55  ;;  %v975_v55 = vld [vmem:[#allocation7 + $0x10] sm:$0xff] }
 0x33d   : > { %1525 = vmatpush.msrb.mxu2 %v975_v55  ;;  %v1834_v55 = vld [vmem:[#allocation10 + $0x10] sm:$0xff] }
 0x344   : > { %3048 = vmatmul.msk.f32.vlgmr.msra.gmra.mxu1 %vm980_vm1, %v1377_v37 }
 0x366   : > { %v1105_v57 = vpop.f32.mrf.mxu3 }
 0x367   : > { %3043 = vmatmul.msk.f32.vlgmr.msra.gmra.mxu0 %vm980_vm1, %v1105_v57 }
 0x374   : > { %v1131_v58 = vpop.f32.mrf.mxu3 }
 0x375   : > { %3044 = vmatmul.msk.f32.gmra.mxu0 %vm980_vm1, %v1131_v58 }
 0x37d   : > { %v1261_v59 = vpop.f32.mrf.mxu3  ;;  %3054 = vmatmul.msk.f32.vlgmr.msrb.gmra.mxu0 %vm980_vm1, %v1536_v41 }
 0x37e   : > { %3041 = vmatmul.msk.f32.vlgmr.msra.gmra.mxu2 %vm980_vm1, %v1261_v59 }
 0x385   : > { %v1373_v60 = vpop.f32.mrf.mxu3 }
 0x386   : > { %v1374_v53 = vadd.f32 %v1373_v60, %v3986_v19 }
 0x388   : > { %v1404_v61 = vsel %vm980_vm1, %v1374_v53, -inf }
 0x389   : > { %1405 = vmax.xlane.f32.xlu1 %v1404_v61 }
 0x3b9   : > { %v1287_v62 = vpop.f32.mrf.mxu1 }
 0x3ba   : > { %3042 = vmatmul.msk.f32.gmra.mxu2 %vm980_vm1, %v1287_v62 }
 0x3c1   : > { %v1401_v63 = vpop.f32.mrf.mxu1 }
 0x3c2   : > { %v1402_v0 = vadd.f32 %v1401_v63, %v3992_v26 }
 0x3c4   : > { %v1407_v1 = vsel %vm980_vm1, %v1402_v0, -inf }
 0x3c5   : > { %1408 = vmax.xlane.f32.xlu1 %v1407_v1 }
 0x3e4   : > { %v4059_v2 = vpop.f32.mrf.mxu0 }
 0x3f2   : > { %v4061_v3 = vpop.f32.mrf.mxu0 }
 0x3fa   : > { %v1560_v6 = vpop.f32.mrf.mxu0 }
 0x3fb   : > { %v1561_v7 = vadd.f32 %v1560_v6, %v3986_v19 }
 0x3fc   : > { %v1406_v9 = vpop.xlane.xlu1 %1405 }
 0x3fd   : > { %v1410_v11 = vsub.f32 %v1374_v53, %v1406_v9  ;;  %v1591_v12 = vsel %vm980_vm1, %v1561_v7, -inf }
 0x3fe   : > { %1592 = vmax.xlane.f32.xlu1 %v1591_v12 }
 0x3ff   : > { %v1412_v13 = vmul.f32 1.442695, %v1410_v11 }
 0x401   : > { %3260 = vpow2.f32 %v1412_v13 }
 0x407   : > { %v3261_v14 = vpop.eup %3260 }
 0x408   : > { %v1416_v15 = vsel %vm980_vm1, %v3261_v14, 0.0 }
 0x409   : > { %1417 = vadd.xlane.f32.xlu0 %v1416_v15 }
 0x41d   : > { %1565 = vrot.lane.b32.xlu0 %v3956_v10, %s3627_s2 }
 0x425   : > { %1478 = vrot.lane.b32.xlu0 %v3956_v10, %s3629_s12  ;;  %s4456_s12 = sld [smem:[#allocation31_spill]] }
 0x438   : > { %v1409_v16 = vpop.xlane.xlu1 %1408 }
 0x439   : > { %v1411_v17 = vsub.f32 %v1402_v0, %v1409_v16 }
 0x43b   : > { %v1414_v19 = vmul.f32 1.442695, %v1411_v17 }
 0x43d   : > { %3262 = vpow2.f32 %v1414_v19 }
 0x443   : > { %v3263_v18 = vpop.eup %3262 }
 0x444   : > { %v1419_v20 = vsel %vm980_vm1, %v3263_v18, 0.0 }
 0x445   : > { %1420 = vadd.xlane.f32.xlu2 %v1419_v20 }
 0x45d   : > { %1665 = vrot.lane.b32.xlu2 %v3956_v10, %s3630_s30 }
 0x471   : > { %v1593_v21 = vpop.xlane.xlu1 %1592 }
 0x472   : > { %v1597_v22 = vsub.f32 %v1561_v7, %v1593_v21 }
 0x474   : > { %v1599_v23 = vmul.f32 1.442695, %v1597_v22 }
 0x476   : > { %3264 = vpow2.f32 %v1599_v23 }
 0x47c   : > { %v4073_v24 = vpop.eup %3264  ;;  %v1418_v25 = vpop.xlane.xlu0 %1417 }
 0x47d   : > { %3266 = vrcp.f32 %v1418_v25  ;;  %v1603_v27 = vsel %vm980_vm1, %v4073_v24, 0.0  ;;  %v1433_v31 = vand.u32 2147483648, %v1418_v25  ;;  %v1431_v33 = vand.u32 2147483647, %v1418_v25 }
 0x47e   : > { %1604 = vadd.xlane.f32.xlu1 %v1603_v27  ;;  %vm1427_vm5 = vweird.f32 %v1418_v25 }
 0x47f   : > { %v1434_v34 = vor.u32 1.1754944e-38, %v1433_v31  ;;  %vm1432_vm7 = vcmp.eq.f32.partialorder %v1431_v33, 8.507059e+37 }
 0x483   : > { %v3267_v28 = vpop.eup %3266 }
 0x484   : > { %v1423_v29 = vmul.f32 %v3267_v28, %v1418_v25  ;;  %vm1428_vm4 = vweird.f32 %v3267_v28  ;;  %v4097_v25 = vld [vmem:[%s4454_s22] ss:$0 sm:$0xff] }
 0x485   : > { %vm1429_vm6 = vmor %vm1427_vm5, %vm1428_vm4 }
 0x486   : > { %v1424_v30 = vsub.f32 1.0, %v1423_v29 }
 0x488   : > { %v1425_v32 = vmul.f32 %v3267_v28, %v1424_v30 }
 0x48a   : > { %v1426_v10 = vadd.f32 %v3267_v28, %v1425_v32 }
 0x48c   : > { %v1430_v35 = vsel %vm1429_vm6, %v3267_v28, %v1426_v10 }
 0x48d   : > { %v1435_v36 = vsel %vm1432_vm7, %v1434_v34, %v1430_v35 }
 0x48e   : > { %v1436_v37 = vmul.f32 %v3261_v14, %v1435_v36  ;;  %v976_v14 = vld [vmem:[#allocation7 + $0x18] sm:$0xff] }
 0x48f   : > { %v1566_v38 = vpop.permute.xlu0 %1565 }
 0x490   : > { %3049 = vmatmul.msk.f32.vlgmr.msra.gmra.mxu3 %vm980_vm1, %v1436_v37 }
 0x491   : > { %3055 = vmatpush.xpose.msk.msrb.mxu3 %vm980_vm1, %v1566_v38 }
 0x495   : > { %1712 = vmatpush.msra.mxu3 %v976_v14 }
 0x497   : > { %v1479_v39 = vpop.permute.xlu0 %1478  ;;  %1639 = vrot.lane.b32.xlu1 %v3950_v8, %s3630_s30 }
 0x498   : > { %1499 = vmatpush.msrb.mxu1 %v1479_v39  ;;  %3056 = vmatmul.msk.f32.vlgmr.msrb.gmra.mxu3 %vm980_vm1, %v1564_v40 }
 0x4b8   : > { %v1421_v41 = vpop.xlane.xlu2 %1420 }
 0x4b9   : > { %3268 = vrcp.f32 %v1421_v41  ;;  %v1448_v46 = vand.u32 2147483648, %v1421_v41  ;;  %v1446_v48 = vand.u32 2147483647, %v1421_v41  ;;  %vm1442_vm9 = vweird.f32 %v1421_v41 }
 0x4bb   : > { %v1449_v51 = vor.u32 1.1754944e-38, %v1448_v46  ;;  %vm1447_vm11 = vcmp.eq.f32.partialorder %v1446_v48, 8.507059e+37 }
 0x4bf   : > { %v3269_v42 = vpop.eup %3268 }
 0x4c0   : > { %v1438_v43 = vmul.f32 %v3269_v42, %v1421_v41  ;;  %v1666_v44 = vpop.permute.xlu2 %1665  ;;  %vm1443_vm8 = vweird.f32 %v3269_v42  ;;  %v3631_v41 = vmov 32.0  }
 0x4c1   : > { %1686 = vmatpush.msra.mxu0 %v1666_v44  ;;  %vm1444_vm10 = vmor %vm1442_vm9, %vm1443_vm8 }
 0x4c2   : > { %v1439_v45 = vsub.f32 1.0, %v1438_v43 }
 0x4c4   : > { %v1440_v47 = vmul.f32 %v3269_v42, %v1439_v45 }
 0x4c6   : > { %v1441_v50 = vadd.f32 %v3269_v42, %v1440_v47 }
 0x4c8   : > { %v1445_v49 = vsel %vm1444_vm10, %v3269_v42, %v1441_v50 }
 0x4c9   : > { %v1450_v8 = vsel %vm1447_vm11, %v1449_v51, %v1445_v49 }
 0x4ca   : > { %v1451_v52 = vmul.f32 %v3263_v18, %v1450_v8 }
 0x4cc   : > { %3050 = vmatmul.msk.f32.vlgmr.msrb.gmra.mxu1 %vm980_vm1, %v1451_v52 }
 0x4f1   : > { %v1605_v54 = vpop.xlane.xlu1 %1604 }
 0x4f2   : > { %3270 = vrcp.f32 %v1605_v54  ;;  %v1620_v53 = vand.u32 2147483648, %v1605_v54  ;;  %vm1614_vm13 = vweird.f32 %v1605_v54  ;;  %v1618_v61 = vand.u32 2147483647, %v1605_v54 }
 0x4f4   : > { %v1621_v63 = vor.u32 1.1754944e-38, %v1620_v53  ;;  %vm1619_vm15 = vcmp.eq.f32.partialorder %v1618_v61, 8.507059e+37  ;;  %v1794_v53 = vld [vmem:[#allocation8 + $0x8] sm:$0xff]  ;;  %v1793_v61 = vld [vmem:[#allocation8] sm:$0xff] }
 0x4f8   : > { %v3271_v56 = vpop.eup %3270 }
 0x4f9   : > { %v1610_v57 = vmul.f32 %v3271_v56, %v1605_v54  ;;  %vm1615_vm12 = vweird.f32 %v3271_v56  ;;  %v1835_v54 = vld [vmem:[#allocation10 + $0x18] sm:$0xff] }
 0x4fa   : > { %vm1616_vm14 = vmor %vm1614_vm13, %vm1615_vm12  ;;  %1858 = vmatpush.msra.mxu2 %v1835_v54 }
 0x4fb   : > { %v1611_v58 = vsub.f32 1.0, %v1610_v57  ;;  %v1832_v57 = vld [vmem:[#allocation10] sm:$0xff] }
 0x4fc   : > { %1859 = vmatpush.msra.mxu2 %v1834_v55 }
 0x4fd   : > { %v1612_v59 = vmul.f32 %v3271_v56, %v1611_v58  ;;  %v1796_v58 = vld [vmem:[#allocation8 + $0x18] sm:$0xff] }
 0x4ff   : > { %v1613_v60 = vadd.f32 %v3271_v56, %v1612_v59  ;;  %v927_v59 = vld [vmem:[%s4112_s8] sm:$0xff] }
 0x501   : > { %v1617_v62 = vsel %vm1616_vm14, %v3271_v56, %v1613_v60  ;;  %v1833_v56 = vld [vmem:[#allocation10 + $0x8] sm:$0xff]  ;;  %v1795_v60 = vld [vmem:[#allocation8 + $0x10] sm:$0xff] }
 0x502   : > { %v1622_v0 = vsel %vm1619_vm15, %v1621_v63, %v1617_v62  ;;  %1860 = vmatpush.msra.mxu2 %v1833_v56 }
 0x503   : > { %v1623_v6 = vmul.f32 %v4073_v24, %v1622_v0 }
 0x504   : > { %1861 = vmatpush.msra.mxu2 %v1832_v57 }
 0x509   : > { %v1640_v1 = vpop.permute.xlu1 %1639 }
 0x50a   : > { %1660 = vmatpush.msra.mxu1 %v1640_v1 }
 0x50b   : > { %3057 = vmatmul.msk.f32.vlgmr.msra.gmra.mxu1 %vm980_vm1, %v1623_v6 }
 0x50c   : > { %1819 = vmatpush.msrb.mxu1 %v1796_v58 }
 0x50e   : > { %1820 = vmatpush.msrb.mxu1 %v1795_v60 }
 0x510   : > { %1821 = vmatpush.msrb.mxu1 %v1794_v53 }
 0x512   : > { %1822 = vmatpush.msrb.mxu1 %v1793_v61 }
 0x513   : > { %v1475_v7 = vpop.f32.mrf.mxu3 }
 0x514   : > { %3051 = vmatmul.msk.f32.vlgmr.msrb.gmra.mxu2 %vm980_vm1, %v1475_v7 }
 0x51b   : > { %v1588_v9 = vpop.f32.mrf.mxu3 }
 0x51c   : > { %v1589_v11 = vadd.f32 %v1588_v9, %v3992_v26  ;;  %v1313_v26 = vpop.f32.mrf.mxu2 }
 0x51d   : > { %v1343_v23 = vadd.f32 %v4059_v2, %v1313_v26 }
 0x51e   : > { %v1594_v12 = vsel %vm980_vm1, %v1589_v11, -inf }
 0x51f   : > { %1595 = vmax.xlane.f32.xlu0 %v1594_v12 }
 0x524   : > { %v4091_v21 = vpop.f32.mrf.mxu2 }
 0x549   : > { %v1501_v13 = vpop.f32.mrf.mxu1 }
 0x54a   : > { %3052 = vmatmul.msk.f32.gmra.mxu2 %vm980_vm1, %v1501_v13 }
 0x552   : > { %3063 = vmatmul.msk.f32.vlgmr.msra.gmra.mxu2 %vm941_vm0, %v927_v59 }
 0x588   : > { %v1662_v15 = vpop.f32.mrf.mxu1 }
 0x589   : > { %3059 = vmatmul.msk.f32.vlgmr.msra.gmra.mxu3 %vm980_vm1, %v1662_v15  ;;  %v4126_v15 = vld [vmem:[%s4392_s9] ss:$0 sm:$0xff] }
 0x592   : > { %v1596_v16 = vpop.xlane.xlu0 %1595 }
 0x593   : > { %v1598_v17 = vsub.f32 %v1589_v11, %v1596_v16  ;;  %v4120_v11 = vld [vmem:[%s4456_s12] ss:$0 sm:$0xff]  ;;  %s4457_s12 = sld [smem:[#allocation36_spill]] }
 0x595   : > { %v1601_v19 = vmul.f32 1.442695, %v1598_v17 }
 0x597   : > { %3272 = vpow2.f32 %v1601_v19  ;;  %v1527_v22 = vpop.f32.mrf.mxu2 }
 0x598   : > { %v1533_v24 = vadd.f32 %v1527_v22, %v1343_v23 }
 0x59d   : > { %v3273_v18 = vpop.eup %3272 }
 0x59e   : > { %v1606_v20 = vsel %vm980_vm1, %v3273_v18, 0.0 }
 0x59f   : > { %1607 = vadd.xlane.f32.xlu1 %v1606_v20  ;;  %v1346_v20 = vadd.f32 %v4061_v3, %v4091_v21 }
 0x60c   : > { %v1714_v27 = vpop.f32.mrf.mxu3 }
 0x60d   : > { %v1720_v28 = vadd.f32 %v1714_v27, %v1533_v24 }
 0x60f   : > { %v1726_v29 = vadd.f32 %v4097_v25, %v1720_v28 }
 0x611   : > { %v1728_v30 = vadd.f32 %v1726_v29, %v3939_v4  ;;  %v3235_v29 = vld [vmem:[%s4396_s13] ss:$0 sm:$0xff] }
 0x612   : > { %v1608_v31 = vpop.xlane.xlu1 %1607 }
 0x613   : > { %3274 = vrcp.f32 %v1608_v31  ;;  %v1730_v32 = vsel %vm941_vm0, %v1728_v30, 0.0  ;;  %v1635_v34 = vand.u32 2147483648, %v1608_v31  ;;  %v1633_v36 = vand.u32 2147483647, %v1608_v31 }
 0x614   : > { %1731 = vadd.xlane.f32.xlu0 %v1730_v32  ;;  %vm1629_vm3 = vweird.f32 %v1608_v31  ;;  %3276 = vrcp.f32 %v3631_v41  ;;  %v928_v32 = vld [vmem:[%s4112_s8 + $0x8] sm:$0xff] }
 0x615   : > { %v1636_v38 = vor.u32 1.1754944e-38, %v1635_v34  ;;  %vm1634_vm5 = vcmp.eq.f32.partialorder %v1633_v36, 8.507059e+37  ;;  %3064 = vmatmul.msk.f32.gmra.mxu2 %vm941_vm0, %v928_v32 }
 0x619   : > { %v3275_v33 = vpop.eup %3274 }
 0x61a   : > { %v1625_v10 = vmul.f32 %v3275_v33, %v1608_v31  ;;  %vm1630_vm2 = vweird.f32 %v3275_v33  ;;  %v3277_v42 = vpop.eup %3276 }
 0x61b   : > { %vm1631_vm4 = vmor %vm1629_vm3, %vm1630_vm2  ;;  %v1737_v43 = vmul.f32 32.0, %v3277_v42  ;;  %vm1741_vm6 = vweird.f32 %v3277_v42 }
 0x61c   : > { %v1626_v2 = vsub.f32 1.0, %v1625_v10 }
 0x61d   : > { %v1738_v44 = vsub.f32 1.0, %v1737_v43 }
 0x61e   : > { %v1627_v35 = vmul.f32 %v3275_v33, %v1626_v2 }
 0x61f   : > { %v1739_v45 = vmul.f32 %v3277_v42, %v1738_v44 }
 0x620   : > { %v1628_v37 = vadd.f32 %v3275_v33, %v1627_v35 }
 0x621   : > { %v1740_v46 = vadd.f32 %v3277_v42, %v1739_v45 }
 0x622   : > { %v1632_v39 = vsel %vm1631_vm4, %v3275_v33, %v1628_v37 }
 0x623   : > { %v1637_v40 = vsel %vm1634_vm5, %v1636_v38, %v1632_v39  ;;  %v4103_v47 = vsel %vm1741_vm6, %v3277_v42, %v1740_v46  ;;  %v4167_v38 = vld [vmem:[%s3914_s14] sm:$0xff] }
 0x624   : > { %v1638_v4 = vmul.f32 %v3273_v18, %v1637_v40  ;;  %v1530_v18 = vpop.f32.mrf.mxu2 }
 0x625   : > { %v1534_v26 = vadd.f32 %v1530_v18, %v1346_v20 }
 0x626   : > { %3058 = vmatmul.msk.f32.vlgmr.msra.gmra.mxu0 %vm980_vm1, %v1638_v4 }
 0x687   : > { %v1732_v48 = vpop.xlane.xlu0 %1731 }
 0x688   : > { %v1743_v50 = vmul.f32 %v4103_v47, %v1732_v48 }
 0x68a   : > { %v1745_v51 = vsub.f32 %v1728_v30, %v1743_v50  ;;  %v1863_v30 = vpop.f32.mrf.mxu2 }
 0x68b   : > { %v4141_v31 = vadd.f32 %v3235_v29, %v1863_v30 }
 0x68c   : > { %v1747_v49 = vmul.f32 %v1745_v51, %v1745_v51  ;;  %v1761_v14 = vmul.f32 %v4120_v11, %v1745_v51 }
 0x68d   : > { %3065 = vmatpush.xpose.msk.msrb.mxu0 %vm980_vm1, %v4141_v31  ;;  %2027 = vrot.lane.b32.xlu1 %v4141_v31, %s3622_s29 }
 0x68e   : > { %v1749_v8 = vsel %vm941_vm0, %v1747_v49, 0.0 }
 0x68f   : > { %1750 = vadd.xlane.f32.xlu2 %v1749_v8 }
 0x698   : > { %v1866_v44 = vpop.f32.mrf.mxu2 }
 0x699   : > { %v4172_v45 = vadd.f32 %v3235_v29, %v1866_v44 }
 0x69b   : > { %3067 = vmatpush.xpose.msk.msra.mxu0 %vm980_vm1, %v4172_v45 }
 0x6a3   : > { %v1688_v52 = vpop.f32.mrf.mxu0 }
 0x6a4   : > { %3060 = vmatmul.msk.f32.gmra.mxu3 %vm980_vm1, %v1688_v52 }
 0x6a7   : > { %1973 = vrot.lane.b32.xlu2 %v4141_v31, %s3621_s10 }
 0x6af   : > { %2055 = vrot.lane.b32.xlu2 %v4172_v45, %s3622_s29 }
 0x6ff   : > { %v2028_v37 = vpop.permute.xlu1 %2027 }
 0x700   : > { %3071 = vmatpush.xpose.msk.msrb.mxu2 %vm980_vm1, %v2028_v37 }
 0x702   : > { %v1751_v62 = vpop.xlane.xlu2 %1750 }
 0x703   : > { %v1755_v63 = vmul.f32 %v1751_v62, %v4103_v47 }
 0x705   : > { %v1763_v0 = vadd.f32 1e-05, %v1755_v63 }
 0x707   : > { %3278 = vrsqrt.f32 %v1763_v0  ;;  %vm1771_vm8 = vweird.f32 %v1763_v0 }
 0x70a   : > { %v1974_v36 = vpop.permute.xlu2 %1973 }
 0x70b   : > { %1994 = vmatpush.msrb.mxu3 %v1974_v36 }
 0x70d   : > { %v3279_v1 = vpop.eup %3278 }
 0x70e   : > { %v1766_v6 = vmul.f32 %v3279_v1, %v1763_v0  ;;  %vm1772_vm7 = vweird.f32 %v3279_v1 }
 0x70f   : > { %vm1773_vm9 = vmor %vm1771_vm8, %vm1772_vm7 }
 0x710   : > { %v1767_v7 = vmul.f32 %v3279_v1, %v1766_v6 }
 0x712   : > { %v1768_v9 = vmul.f32 0.5, %v1767_v7  ;;  %v2056_v63 = vpop.permute.xlu2 %2055 }
 0x714   : > { %v1769_v12 = vsub.f32 1.5, %v1768_v9 }
 0x716   : > { %v1770_v13 = vmul.f32 %v3279_v1, %v1769_v12 }
 0x718   : > { %v1774_v16 = vsel %vm1773_vm9, %v3279_v1, %v1770_v13 }
 0x719   : > { %v1785_v17 = vmul.f32 %v1774_v16, %v1761_v14 }
 0x71b   : > { %v4129_v19 = vadd.f32 %v4126_v15, %v1785_v17 }
 0x71d   : > { %3061 = vmatmul.msk.f32.vlgmr.msrb.gmra.mxu1 %vm941_vm0, %v4129_v19 }
 0x727   : > { %v1717_v22 = vpop.f32.mrf.mxu3 }
 0x728   : > { %v1721_v23 = vadd.f32 %v1717_v22, %v1534_v26 }
 0x72a   : > { %v1727_v24 = vadd.f32 %v4097_v25, %v1721_v23 }
 0x72c   : > { %v1729_v27 = vadd.f32 %v1727_v24, %v3943_v5  ;;  %v4152_v5 = vld [vmem:[%s4394_s11] ss:$0 sm:$0xff] }
 0x72e   : > { %v1733_v28 = vsel %vm941_vm0, %v1729_v27, 0.0 }
 0x72f   : > { %1734 = vadd.xlane.f32.xlu0 %v1733_v28 }
 0x79a   : > { %v1824_v3 = vpop.f32.mrf.mxu1 }
 0x79b   : > { %v1825_v21 = vadd.f32 %v4152_v5, %v1824_v3  ;;  %v4205_v3 = vld [vmem:[%s3914_s14 + $0x8] sm:$0xff] }
 0x79d   : > { %v4155_v25 = vmul.f32 0.35355338, %v1825_v21 }
 0x79f   : > { %3066 = vmatmul.msk.f32.vlgmr.msrb.gmra.mxu0 %vm980_vm1, %v4155_v25 }
 0x7a0   : > { %3073 = vmatpush.xpose.msk.msrb.mxu0 %vm980_vm1, %v2056_v63 }
 0x7a2   : > { %v1735_v33 = vpop.xlane.xlu0 %1734 }
 0x7a3   : > { %v1744_v10 = vmul.f32 %v4103_v47, %v1735_v33 }
 0x7a5   : > { %v1746_v2 = vsub.f32 %v1729_v27, %v1744_v10 }
 0x7a7   : > { %v1748_v34 = vmul.f32 %v1746_v2, %v1746_v2  ;;  %v1762_v54 = vmul.f32 %v4120_v11, %v1746_v2 }
 0x7a9   : > { %v1752_v35 = vsel %vm941_vm0, %v1748_v34, 0.0 }
 0x7aa   : > { %1753 = vadd.xlane.f32.xlu0 %v1752_v35  ;;  %v1869_v35 = vld [vmem:[#allocation11] sm:$0xff] }
 0x7be   : > { %2025 = vrot.lane.b32.xlu0 %v4155_v25, %s3622_s29 }
 0x81c   : > { %v1896_v39 = vpop.f32.mrf.mxu0 }
 0x81d   : > { %v1754_v40 = vpop.xlane.xlu0 %1753  ;;  %v1897_v4 = vadd.f32 %v1896_v39, %v4167_v38 }
 0x81e   : > { %v1756_v41 = vmul.f32 %v1754_v40, %v4103_v47 }
 0x81f   : > { %v1925_v43 = vsel %vm980_vm1, %v1897_v4, -inf }
 0x820   : > { %v1764_v42 = vadd.f32 1e-05, %v1756_v41  ;;  %1926 = vmax.xlane.f32.xlu1 %v1925_v43 }
 0x822   : > { %3280 = vrsqrt.f32 %v1764_v42  ;;  %vm1781_vm11 = vweird.f32 %v1764_v42 }
 0x828   : > { %v3281_v46 = vpop.eup %3280 }
 0x829   : > { %v1776_v48 = vmul.f32 %v3281_v46, %v1764_v42  ;;  %vm1782_vm10 = vweird.f32 %v3281_v46 }
 0x82a   : > { %vm1783_vm12 = vmor %vm1781_vm11, %vm1782_vm10 }
 0x82b   : > { %v1777_v50 = vmul.f32 %v3281_v46, %v1776_v48 }
 0x82d   : > { %v1778_v51 = vmul.f32 0.5, %v1777_v50 }
 0x82f   : > { %v1779_v49 = vsub.f32 1.5, %v1778_v51 }
 0x830   : > { %v2026_v8 = vpop.permute.xlu0 %2025 }
 0x831   : > { %v1780_v52 = vmul.f32 %v3281_v46, %v1779_v49  ;;  %3072 = vmatmul.msk.f32.vlgmr.msrb.gmra.mxu2 %vm980_vm1, %v2026_v8 }
 0x833   : > { %v1784_v55 = vsel %vm1783_vm12, %v3281_v46, %v1780_v52 }
 0x834   : > { %v1786_v56 = vmul.f32 %v1784_v55, %v1762_v54 }
 0x836   : > { %v4181_v57 = vadd.f32 %v4126_v15, %v1786_v56 }
 0x838   : > { %3062 = vmatmul.msk.f32.gmra.mxu1 %vm941_vm0, %v4181_v57 }
 0x839   : > { %2129 = vrot.lane.b32.xlu1 %v4141_v31, %s3620_s6 }
 0x841   : > { %1999 = vrot.lane.b32.xlu1 %v4172_v45, %s3621_s10  ;;  %s3552_s10 = scalar_lea.hbm %s4460_s1, 32 }
 0x893   : > { %v1927_v58 = vpop.xlane.xlu1 %1926 }
 0x894   : > { %v1931_v59 = vsub.f32 %v1897_v4, %v1927_v58 }
 0x896   : > { %v1933_v60 = vmul.f32 1.442695, %v1931_v59 }
 0x898   : > { %3282 = vpow2.f32 %v1933_v60 }
 0x89e   : > { %v3283_v53 = vpop.eup %3282 }
 0x89f   : > { %v1937_v61 = vsel %vm980_vm1, %v3283_v53, 0.0 }
 0x8a0   : > { %1938 = vadd.xlane.f32.xlu2 %v1937_v61 }
 0x8ab   : > { %v2130_v62 = vpop.permute.xlu1 %2129 }
 0x8ac   : > { %2150 = vmatpush.msra.mxu3 %v2130_v62 }
 0x8b3   : > { %v2000_v12 = vpop.permute.xlu1 %1999 }
 0x8b4   : > { %v2050_v0 = vpop.f32.mrf.mxu2  ;;  %2020 = vmatpush.msra.mxu1 %v2000_v12 }
 0x8b5   : > { %v2051_v1 = vadd.f32 %v2050_v0, %v4167_v38  ;;  %v1827_v6 = vpop.f32.mrf.mxu1 }
 0x8b6   : > { %v1828_v7 = vadd.f32 %v4152_v5, %v1827_v6 }
 0x8b7   : > { %v2081_v9 = vsel %vm980_vm1, %v2051_v1, -inf }
 0x8b8   : > { %v4194_v11 = vmul.f32 0.35355338, %v1828_v7  ;;  %2082 = vmax.xlane.f32.xlu0 %v2081_v9  ;;  %2241 = vrot.lane.b32.xlu2 %v4141_v31, %s3625_s21 }
 0x8ba   : > { %3068 = vmatmul.msk.f32.vlgmr.msra.gmra.mxu0 %vm980_vm1, %v4194_v11 }
 0x8bb   : > { %2231 = vmatpush.msra.mxu0 %v1869_v35 }
 0x8cc   : > { %2053 = vrot.lane.b32.xlu0 %v4194_v11, %s3622_s29 }
 0x913   : > { %v1939_v13 = vpop.xlane.xlu2 %1938 }
 0x914   : > { %3284 = vrcp.f32 %v1939_v13  ;;  %v1954_v17 = vand.u32 2147483648, %v1939_v13  ;;  %v1952_v20 = vand.u32 2147483647, %v1939_v13  ;;  %vm1948_vm14 = vweird.f32 %v1939_v13 }
 0x916   : > { %v1955_v22 = vor.u32 1.1754944e-38, %v1954_v17  ;;  %vm1953_vm2 = vcmp.eq.f32.partialorder %v1952_v20, 8.507059e+37 }
 0x91a   : > { %v3285_v14 = vpop.eup %3284 }
 0x91b   : > { %v1944_v15 = vmul.f32 %v3285_v14, %v1939_v13  ;;  %vm1949_vm13 = vweird.f32 %v3285_v14  ;;  %v2242_v28 = vpop.permute.xlu2 %2241 }
 0x91c   : > { %vm1950_vm15 = vmor %vm1948_vm14, %vm1949_vm13 }
 0x91d   : > { %v1945_v16 = vsub.f32 1.0, %v1944_v15 }
 0x91f   : > { %v1946_v18 = vmul.f32 %v3285_v14, %v1945_v16 }
 0x921   : > { %v1947_v26 = vadd.f32 %v3285_v14, %v1946_v18 }
 0x923   : > { %v1951_v23 = vsel %vm1950_vm15, %v3285_v14, %v1947_v26 }
 0x924   : > { %v1956_v24 = vsel %vm1953_vm2, %v1955_v22, %v1951_v23 }
 0x925   : > { %v1957_v27 = vmul.f32 %v3283_v53, %v1956_v24  ;;  %v1870_v53 = vld [vmem:[#allocation11 + $0x8] sm:$0xff] }
 0x926   : > { %2202 = vmatpush.msra.mxu2 %v1870_v53 }
 0x927   : > { %3069 = vmatmul.msk.f32.vlgmr.msrb.gmra.mxu3 %vm980_vm1, %v1957_v27 }
 0x928   : > { %3081 = vmatpush.xpose.msk.msrb.mxu3 %vm980_vm1, %v2242_v28 }
 0x92b   : > { %v2083_v29 = vpop.xlane.xlu0 %2082 }
 0x92c   : > { %v2087_v30 = vsub.f32 %v2051_v1, %v2083_v29 }
 0x92e   : > { %v2089_v5 = vmul.f32 1.442695, %v2087_v30 }
 0x930   : > { %3286 = vpow2.f32 %v2089_v5 }
 0x936   : > { %v3287_v21 = vpop.eup %3286 }
 0x937   : > { %v1922_v32 = vpop.f32.mrf.mxu0  ;;  %v2093_v33 = vsel %vm980_vm1, %v3287_v21, 0.0 }
 0x938   : > { %v1923_v10 = vadd.f32 %v1922_v32, %v4205_v3  ;;  %2094 = vadd.xlane.f32.xlu2 %v2093_v33 }
 0x93a   : > { %v1928_v2 = vsel %vm980_vm1, %v1923_v10, -inf }
 0x93b   : > { %1929 = vmax.xlane.f32.xlu0 %v1928_v2 }
 0x93e   : > { %v2054_v34 = vpop.permute.xlu0 %2053 }
 0x93f   : > { %3074 = vmatmul.msk.f32.vlgmr.msrb.gmra.mxu0 %vm980_vm1, %v2054_v34 }
 0x94f   : > { %2267 = vrot.lane.b32.xlu0 %v4194_v11, %s3625_s21 }
 0x950   : > { %2239 = vrot.lane.b32.xlu2 %v4155_v25, %s3625_s21 }
 0x9aa   : > { %v1996_v36 = vpop.f32.mrf.mxu3 }
 0x9ab   : > { %v2095_v37 = vpop.xlane.xlu2 %2094  ;;  %3079 = vmatmul.msk.f32.vlgmr.msra.gmra.mxu0 %vm980_vm1, %v1996_v36 }
 0x9ac   : > { %3288 = vrcp.f32 %v2095_v37  ;;  %v2110_v44 = vand.u32 2147483648, %v2095_v37  ;;  %v2108_v48 = vand.u32 2147483647, %v2095_v37  ;;  %vm2104_vm4 = vweird.f32 %v2095_v37 }
 0x9ae   : > { %v1930_v39 = vpop.xlane.xlu0 %1929  ;;  %v2111_v49 = vor.u32 1.1754944e-38, %v2110_v44  ;;  %vm2109_vm6 = vcmp.eq.f32.partialorder %v2108_v48, 8.507059e+37 }
 0x9af   : > { %v1932_v40 = vsub.f32 %v1923_v10, %v1930_v39 }
 0x9b1   : > { %v1935_v4 = vmul.f32 1.442695, %v1932_v40 }
 0x9b2   : > { %v3289_v41 = vpop.eup %3288 }
 0x9b3   : > { %v2100_v42 = vmul.f32 %v3289_v41, %v2095_v37  ;;  %3290 = vpow2.f32 %v1935_v4  ;;  %vm2105_vm3 = vweird.f32 %v3289_v41  ;;  %v2240_v60 = vpop.permute.xlu2 %2239 }
 0x9b4   : > { %vm2106_vm5 = vmor %vm2104_vm4, %vm2105_vm3 }
 0x9b5   : > { %v2101_v43 = vsub.f32 1.0, %v2100_v42 }
 0x9b7   : > { %v2102_v46 = vmul.f32 %v3289_v41, %v2101_v43 }
 0x9b9   : > { %v3291_v50 = vpop.eup %3290  ;;  %v2103_v51 = vadd.f32 %v3289_v41, %v2102_v46 }
 0x9ba   : > { %v1940_v8 = vsel %vm980_vm1, %v3291_v50, 0.0 }
 0x9bb   : > { %v2107_v52 = vsel %vm2106_vm5, %v3289_v41, %v2103_v51  ;;  %1941 = vadd.xlane.f32.xlu2 %v1940_v8 }
 0x9bc   : > { %v2112_v54 = vsel %vm2109_vm6, %v2111_v49, %v2107_v52  ;;  %v2078_v55 = vpop.f32.mrf.mxu0 }
 0x9bd   : > { %v2079_v56 = vadd.f32 %v2078_v55, %v4205_v3  ;;  %v2113_v58 = vmul.f32 %v3287_v21, %v2112_v54 }
 0x9bf   : > { %3075 = vmatmul.msk.f32.vlgmr.msra.gmra.mxu3 %vm980_vm1, %v2113_v58  ;;  %v2084_v59 = vsel %vm980_vm1, %v2079_v56, -inf }
 0x9c0   : > { %2085 = vmax.xlane.f32.xlu1 %v2084_v59 }
 0x9c1   : > { %v2268_v32 = vpop.permute.xlu0 %2267 }
 0x9c7   : > { %3082 = vmatmul.msk.f32.vlgmr.msrb.gmra.mxu3 %vm980_vm1, %v2240_v60 }
 0x9d3   : > { %2155 = vrot.lane.b32.xlu2 %v4172_v45, %s3620_s6  ;;  %s4458_s6 = sld [smem:[#allocation37_spill]] }
 0x9d9   : > { %2269 = vrot.lane.b32.xlu1 %v4172_v45, %s3625_s21  ;;  %s904_s21 = scalar_lea.vmem [#allocation14], %s3013_s27 }
 0x9da   : > { %s2831_s27 = sshll.u32 %s904_s21, 4  ;;  %s2832_s27 = int_to_ptr.vmem [resolvable:$true] %s2831_s27 }
 0x9db   : > { %2343 = vrot.lane.b32.xlu2 %v4141_v31, %s3624_s24 }
 0x9e1   : > { %2456 = vrot.lane.b32.xlu1 %v4172_v45, %s3628_s0 }
 0xa28   : > { %v4248_v52 = vpop.f32.mrf.mxu0 }
 0xa2e   : > { %v1942_v61 = vpop.xlane.xlu2 %1941 }
 0xa2f   : > { %3292 = vrcp.f32 %v1942_v61  ;;  %v1969_v12 = vand.u32 2147483648, %v1942_v61  ;;  %v1967_v14 = vand.u32 2147483647, %v1942_v61  ;;  %vm1963_vm8 = vweird.f32 %v1942_v61 }
 0xa31   : > { %v1970_v16 = vor.u32 1.1754944e-38, %v1969_v12  ;;  %vm1968_vm10 = vcmp.eq.f32.partialorder %v1967_v14, 8.507059e+37 }
 0xa33   : > { %v2086_v62 = vpop.xlane.xlu1 %2085 }
 0xa34   : > { %v2088_v63 = vsub.f32 %v2079_v56, %v2086_v62 }
 0xa35   : > { %v3293_v0 = vpop.eup %3292 }
 0xa36   : > { %v1959_v1 = vmul.f32 %v3293_v0, %v1942_v61  ;;  %v2091_v6 = vmul.f32 1.442695, %v2088_v63  ;;  %v2156_v7 = vpop.permute.xlu2 %2155  ;;  %vm1964_vm7 = vweird.f32 %v3293_v0 }
 0xa37   : > { %2176 = vmatpush.msrb.mxu1 %v2156_v7  ;;  %vm1965_vm9 = vmor %vm1963_vm8, %vm1964_vm7 }
 0xa38   : > { %v1960_v9 = vsub.f32 1.0, %v1959_v1  ;;  %3294 = vpow2.f32 %v2091_v6 }
 0xa3a   : > { %v1961_v13 = vmul.f32 %v3293_v0, %v1960_v9 }
 0xa3c   : > { %v1962_v15 = vadd.f32 %v3293_v0, %v1961_v13 }
 0xa3e   : > { %v3295_v17 = vpop.eup %3294  ;;  %v1966_v18 = vsel %vm1965_vm9, %v3293_v0, %v1962_v15  ;;  %v2344_v20 = vpop.permute.xlu2 %2343  ;;  %v1871_v15 = vld [vmem:[#allocation11 + $0x10] sm:$0xff] }
 0xa3f   : > { %v1971_v26 = vsel %vm1968_vm10, %v1970_v16, %v1966_v18  ;;  %2364 = vmatpush.msra.mxu3 %v2344_v20  ;;  %v2096_v22 = vsel %vm980_vm1, %v3295_v17, 0.0  ;;  %2416 = vmatpush.msrb.mxu2 %v1871_v15 }
 0xa40   : > { %2097 = vadd.xlane.f32.xlu2 %v2096_v22  ;;  %v1972_v23 = vmul.f32 %v3291_v50, %v1971_v26 }
 0xa42   : > { %3070 = vmatmul.msk.f32.vlgmr.msra.gmra.mxu1 %vm980_vm1, %v1972_v23  ;;  %v2152_v24 = vpop.f32.mrf.mxu3 }
 0xa43   : > { %3077 = vmatmul.msk.f32.vlgmr.msra.gmra.mxu2 %vm980_vm1, %v2152_v24 }
 0xa4a   : > { %v2264_v27 = vpop.f32.mrf.mxu3 }
 0xa4b   : > { %v2265_v28 = vadd.f32 %v2264_v27, %v4167_v38  ;;  %v2270_v29 = vpop.permute.xlu1 %2269 }
 0xa4c   : > { %3083 = vmatpush.xpose.msk.msra.mxu1 %vm980_vm1, %v2270_v29 }
 0xa4d   : > { %v2295_v30 = vsel %vm980_vm1, %v2265_v28, -inf }
 0xa4e   : > { %2296 = vmax.xlane.f32.xlu0 %v2295_v30 }
 0xa53   : > { %v2457_v5 = vpop.permute.xlu1 %2456 }
 0xa54   : > { %3091 = vmatpush.xpose.msk.msrb.mxu3 %vm980_vm1, %v2457_v5 }
 0xa58   : > { %2426 = vrot.lane.b32.xlu2 %v4155_v25, %s3628_s0 }
 0xa62   : > { %2428 = vrot.lane.b32.xlu0 %v4141_v31, %s3628_s0 }
 0xab3   : > { %v2098_v21 = vpop.xlane.xlu2 %2097 }
 0xab4   : > { %3296 = vrcp.f32 %v2098_v21  ;;  %v2125_v34 = vand.u32 2147483648, %v2098_v21  ;;  %v2123_v36 = vand.u32 2147483647, %v2098_v21  ;;  %vm2119_vm12 = vweird.f32 %v2098_v21 }
 0xab6   : > { %v2126_v25 = vor.u32 1.1754944e-38, %v2125_v34  ;;  %vm2124_vm14 = vcmp.eq.f32.partialorder %v2123_v36, 8.507059e+37 }
 0xaba   : > { %v3297_v33 = vpop.eup %3296 }
 0xabb   : > { %v2115_v10 = vmul.f32 %v3297_v33, %v2098_v21  ;;  %vm2120_vm11 = vweird.f32 %v3297_v33  ;;  %v2427_v51 = vpop.permute.xlu2 %2426 }
 0xabc   : > { %vm2121_vm13 = vmor %vm2119_vm12, %vm2120_vm11 }
 0xabd   : > { %v2116_v2 = vsub.f32 1.0, %v2115_v10 }
 0xabf   : > { %v2117_v35 = vmul.f32 %v3297_v33, %v2116_v2  ;;  %v2022_v37 = vpop.f32.mrf.mxu1 }
 0xac0   : > { %3080 = vmatmul.msk.f32.gmra.mxu0 %vm980_vm1, %v2022_v37 }
 0xac1   : > { %v2118_v39 = vadd.f32 %v3297_v33, %v2117_v35  ;;  %v2297_v40 = vpop.xlane.xlu0 %2296 }
 0xac2   : > { %v2301_v4 = vsub.f32 %v2265_v28, %v2297_v40 }
 0xac3   : > { %v2122_v41 = vsel %vm2121_vm13, %v3297_v33, %v2118_v39 }
 0xac4   : > { %v2127_v42 = vsel %vm2124_vm14, %v2126_v25, %v2122_v41  ;;  %v2303_v43 = vmul.f32 1.442695, %v2301_v4 }
 0xac5   : > { %v2128_v44 = vmul.f32 %v3295_v17, %v2127_v42 }
 0xac6   : > { %3298 = vpow2.f32 %v2303_v43 }
 0xac7   : > { %3076 = vmatmul.msk.f32.vlgmr.msrb.gmra.mxu1 %vm980_vm1, %v2128_v44 }
 0xacc   : > { %v3299_v46 = vpop.eup %3298 }
 0xacd   : > { %v2307_v48 = vsel %vm980_vm1, %v3299_v46, 0.0 }
 0xace   : > { %2308 = vadd.xlane.f32.xlu0 %v2307_v48 }
 0xacf   : > { %3084 = vmatmul.msk.f32.vlgmr.msra.gmra.mxu1 %vm980_vm1, %v2268_v32 }
 0xad4   : > { %v2429_v50 = vpop.permute.xlu0 %2428 }
 0xad5   : > { %3089 = vmatpush.xpose.msk.msrb.mxu0 %vm980_vm1, %v2429_v50 }
 0xad8   : > { %3090 = vmatmul.msk.f32.vlgmr.msrb.gmra.mxu0 %vm980_vm1, %v2427_v51 }
 0xae2   : > { %2454 = vrot.lane.b32.xlu0 %v4194_v11, %s3628_s0 }
 0xb3d   : > { %v4251_v60 = vpop.f32.mrf.mxu0 }
 0xb41   : > { %v2309_v49 = vpop.xlane.xlu0 %2308 }
 0xb42   : > { %3300 = vrcp.f32 %v2309_v49  ;;  %v2324_v58 = vand.u32 2147483648, %v2309_v49  ;;  %v2322_v61 = vand.u32 2147483647, %v2309_v49  ;;  %vm2318_vm2 = vweird.f32 %v2309_v49 }
 0xb44   : > { %v2178_v8 = vpop.f32.mrf.mxu1  ;;  %v2325_v0 = vor.u32 1.1754944e-38, %v2324_v58  ;;  %vm2323_vm4 = vcmp.eq.f32.partialorder %v2322_v61, 8.507059e+37  ;;  %v1872_v61 = vld [vmem:[#allocation11 + $0x18] sm:$0xff] }
 0xb45   : > { %3078 = vmatmul.msk.f32.gmra.mxu2 %vm980_vm1, %v2178_v8 }
 0xb48   : > { %v3301_v54 = vpop.eup %3300 }
 0xb49   : > { %v2314_v55 = vmul.f32 %v3301_v54, %v2309_v49  ;;  %vm2319_vm15 = vweird.f32 %v3301_v54 }
 0xb4a   : > { %vm2320_vm3 = vmor %vm2318_vm2, %vm2319_vm15 }
 0xb4b   : > { %v2315_v56 = vsub.f32 1.0, %v2314_v55 }
 0xb4c   : > { %v2292_v59 = vpop.f32.mrf.mxu1 }
 0xb4d   : > { %v2316_v53 = vmul.f32 %v3301_v54, %v2315_v56  ;;  %v2293_v62 = vadd.f32 %v2292_v59, %v4205_v3 }
 0xb4f   : > { %v2317_v11 = vadd.f32 %v3301_v54, %v2316_v53  ;;  %v2298_v63 = vsel %vm980_vm1, %v2293_v62, -inf }
 0xb50   : > { %2299 = vmax.xlane.f32.xlu1 %v2298_v63 }
 0xb51   : > { %v2321_v1 = vsel %vm2320_vm3, %v3301_v54, %v2317_v11 }
 0xb52   : > { %v2326_v6 = vsel %vm2323_vm4, %v2325_v0, %v2321_v1 }
 0xb53   : > { %v2327_v7 = vmul.f32 %v3299_v46, %v2326_v6 }
 0xb54   : > { %v2455_v14 = vpop.permute.xlu0 %2454 }
 0xb55   : > { %3085 = vmatmul.msk.f32.vlgmr.msra.gmra.mxu3 %vm980_vm1, %v2327_v7  ;;  %v2451_v9 = vpop.f32.mrf.mxu0 }
 0xb56   : > { %v2452_v12 = vadd.f32 %v2451_v9, %v4167_v38  ;;  %2603 = vmatpush.msra.mxu3 %v1872_v61 }
 0xb58   : > { %v2482_v13 = vsel %vm980_vm1, %v2452_v12, -inf }
 0xb59   : > { %2483 = vmax.xlane.f32.xlu2 %v2482_v13 }
 0xb5d   : > { %3092 = vmatmul.msk.f32.vlgmr.msrb.gmra.mxu3 %vm980_vm1, %v2455_v14 }
 0xbc3   : > { %v2300_v16 = vpop.xlane.xlu1 %2299 }
 0xbc4   : > { %v2302_v17 = vsub.f32 %v2293_v62, %v2300_v16 }
 0xbc6   : > { %v2305_v18 = vmul.f32 1.442695, %v2302_v17 }
 0xbc8   : > { %3302 = vpow2.f32 %v2305_v18  ;;  %v2204_v18 = vpop.f32.mrf.mxu2 }
 0xbcc   : > { %v2484_v20 = vpop.xlane.xlu2 %2483 }
 0xbcd   : > { %v2488_v26 = vsub.f32 %v2452_v12, %v2484_v20 }
 0xbce   : > { %v3303_v22 = vpop.eup %3302 }
 0xbcf   : > { %v2490_v23 = vmul.f32 1.442695, %v2488_v26  ;;  %v2310_v24 = vsel %vm980_vm1, %v3303_v22, 0.0 }
 0xbd0   : > { %2311 = vadd.xlane.f32.xlu1 %v2310_v24  ;;  %v2207_v20 = vpop.f32.mrf.mxu2  ;;  %v3237_v24 = vld [vmem:[%s4398_s15] ss:$0 sm:$0xff] }
 0xbd1   : > { %3304 = vpow2.f32 %v2490_v23 }
 0xbd7   : > { %v3305_v38 = vpop.eup %3304 }
 0xbd8   : > { %v2366_v27 = vpop.f32.mrf.mxu3  ;;  %v2494_v28 = vsel %vm980_vm1, %v3305_v38, 0.0 }
 0xbd9   : > { %2495 = vadd.xlane.f32.xlu2 %v2494_v28  ;;  %3087 = vmatmul.msk.f32.vlgmr.msrb.gmra.mxu2 %vm980_vm1, %v2366_v27 }
 0xbe0   : > { %v2479_v29 = vpop.f32.mrf.mxu3 }
 0xbe1   : > { %v2480_v30 = vadd.f32 %v2479_v29, %v4205_v3 }
 0xbe3   : > { %v2485_v5 = vsel %vm980_vm1, %v2480_v30, -inf }
 0xbe4   : > { %2486 = vmax.xlane.f32.xlu0 %v2485_v5 }
 0xbe9   : > { %2369 = vrot.lane.b32.xlu1 %v4172_v45, %s3624_s24  ;;  %s4459_s24 = sld [smem:[#allocation38_spill]] }
 0xbf1   : > { %2530 = vrot.lane.b32.xlu2 %v4141_v31, %s3627_s2 }
 0xc43   : > { %v2312_v21 = vpop.xlane.xlu1 %2311 }
 0xc44   : > { %3306 = vrcp.f32 %v2312_v21  ;;  %v2339_v3 = vand.u32 2147483648, %v2312_v21  ;;  %vm2333_vm6 = vweird.f32 %v2312_v21  ;;  %v2337_v37 = vand.u32 2147483647, %v2312_v21 }
 0xc46   : > { %v2340_v25 = vor.u32 1.1754944e-38, %v2339_v3  ;;  %vm2338_vm8 = vcmp.eq.f32.partialorder %v2337_v37, 8.507059e+37 }
 0xc4a   : > { %v3307_v32 = vpop.eup %3306 }
 0xc4b   : > { %v2329_v33 = vmul.f32 %v3307_v32, %v2312_v21  ;;  %vm2334_vm5 = vweird.f32 %v3307_v32 }
 0xc4c   : > { %v2496_v10 = vpop.xlane.xlu2 %2495  ;;  %vm2335_vm7 = vmor %vm2333_vm6, %vm2334_vm5  ;;  %vm2728_vm6 = vcmask 523264  }
 0xc4d   : > { %v2330_v2 = vsub.f32 1.0, %v2329_v33  ;;  %3308 = vrcp.f32 %v2496_v10  ;;  %v2511_v46 = vand.u32 2147483648, %v2496_v10  ;;  %vm2505_vm10 = vweird.f32 %v2496_v10 }
 0xc4e   : > { %v2509_v50 = vand.u32 2147483647, %v2496_v10 }
 0xc4f   : > { %v2331_v34 = vmul.f32 %v3307_v32, %v2330_v2  ;;  %v2512_v55 = vor.u32 1.1754944e-38, %v2511_v46 }
 0xc50   : > { %vm2510_vm12 = vcmp.eq.f32.partialorder %v2509_v50, 8.507059e+37 }
 0xc51   : > { %v2332_v35 = vadd.f32 %v3307_v32, %v2331_v34  ;;  %v2237_v34 = vadd.f32 %v4251_v60, %v2207_v20 }
 0xc53   : > { %v3309_v36 = vpop.eup %3308  ;;  %v2336_v40 = vsel %vm2335_vm7, %v3307_v32, %v2332_v35 }
 0xc54   : > { %v2501_v39 = vmul.f32 %v3309_v36, %v2496_v10  ;;  %v2341_v41 = vsel %vm2338_vm8, %v2340_v25, %v2336_v40  ;;  %vm2506_vm9 = vweird.f32 %v3309_v36  ;;  %v2531_v54 = vpop.permute.xlu2 %2530  ;;  %v2680_v40 = vld [vmem:[#allocation13 + $0x18] sm:$0xff]  ;;  %v2679_v25 = vld [vmem:[#allocation13 + $0x10] sm:$0xff] }
 0xc55   : > { %v2342_v49 = vmul.f32 %v3303_v22, %v2341_v41  ;;  %vm2507_vm11 = vmor %vm2505_vm10, %vm2506_vm9  ;;  %v2234_v22 = vadd.f32 %v4248_v52, %v2204_v18  ;;  %v3240_v18 = vld [vmem:[%s4402_s19] ss:$0 sm:$0xff] }
 0xc56   : > { %v2502_v4 = vsub.f32 1.0, %v2501_v39 }
 0xc57   : > { %v2487_v31 = vpop.xlane.xlu0 %2486 }
 0xc58   : > { %v2503_v42 = vmul.f32 %v3309_v36, %v2502_v4  ;;  %v2489_v43 = vsub.f32 %v2480_v30, %v2487_v31  ;;  %v2678_v4 = vld [vmem:[#allocation13 + $0x8] sm:$0xff]  ;;  %v2677_v31 = vld [vmem:[#allocation13] sm:$0xff] }
 0xc5a   : > { %v2504_v44 = vadd.f32 %v3309_v36, %v2503_v42  ;;  %v2492_v48 = vmul.f32 1.442695, %v2489_v43 }
 0xc5b   : > { %v2370_v51 = vpop.permute.xlu1 %2369 }
 0xc5c   : > { %3310 = vpow2.f32 %v2492_v48  ;;  %2390 = vmatpush.msrb.mxu1 %v2370_v51  ;;  %v2508_v8 = vsel %vm2507_vm11, %v3309_v36, %v2504_v44  ;;  %v2418_v26 = vpop.f32.mrf.mxu2 }
 0xc5d   : > { %3086 = vmatmul.msk.f32.vlgmr.msrb.gmra.mxu1 %vm980_vm1, %v2342_v49  ;;  %v2513_v56 = vsel %vm2510_vm12, %v2512_v55, %v2508_v8  ;;  %v2424_v23 = vadd.f32 %v2418_v26, %v2234_v22  ;;  %v3238_v49 = vld [vmem:[%s4399_s16] ss:$0 sm:$0xff] }
 0xc5e   : > { %2551 = vmatpush.msra.mxu1 %v2531_v54  ;;  %v2514_v53 = vmul.f32 %v3305_v38, %v2513_v56 }
 0xc60   : > { %2703 = vmatpush.msrb.mxu1 %v2680_v40 }
 0xc62   : > { %v3311_v58 = vpop.eup %3310  ;;  %2704 = vmatpush.msrb.mxu1 %v2679_v25 }
 0xc63   : > { %v2497_v59 = vsel %vm980_vm1, %v3311_v58, 0.0 }
 0xc64   : > { %2498 = vadd.xlane.f32.xlu0 %v2497_v59  ;;  %2705 = vmatpush.msrb.mxu1 %v2678_v4  ;;  %v3239_v59 = vld [vmem:[%s4400_s17] ss:$0 sm:$0xff] }
 0xc65   : > { %3093 = vmatmul.msk.f32.vlgmr.msra.gmra.mxu1 %vm980_vm1, %v2514_v53 }
 0xc66   : > { %2706 = vmatpush.msrb.mxu1 %v2677_v31 }
 0xc78   : > { %2556 = vrot.lane.b32.xlu0 %v4172_v45, %s3627_s2  ;;  %s3107_s2 = sshll.u32 %s3783_s7, 4  ;;  %s2819_s7 = scalar_lea.sflag [#allocation4], %s3908_s25 }
 0xc79   : > { %s2830_s18 = scalar_lea.hbm %s4460_s1, %s3107_s2 }
 0xc7a   : > { %s2833_s22 = sshll.u32 %s2830_s18, 4  ;;  %s2834_s22 = int_to_ptr.hbm [resolvable:$true] %s2833_s22 }
 0xcd7   : > { %v2499_v62 = vpop.xlane.xlu0 %2498 }
 0xcd8   : > { %3312 = vrcp.f32 %v2499_v62  ;;  %v2526_v6 = vand.u32 2147483648, %v2499_v62  ;;  %v2524_v12 = vand.u32 2147483647, %v2499_v62  ;;  %vm2520_vm14 = vweird.f32 %v2499_v62 }
 0xcda   : > { %v2392_v11 = vpop.f32.mrf.mxu1  ;;  %v2527_v45 = vor.u32 1.1754944e-38, %v2526_v6  ;;  %vm2525_vm2 = vcmp.eq.f32.partialorder %v2524_v12, 8.507059e+37  ;;  %v2719_v6 = vld [vmem:[%s4403_s20 + $0x18] sm:$0xff]  ;;  %v2716_v12 = vld [vmem:[%s4403_s20] sm:$0xff] }
 0xcdb   : > { %3088 = vmatmul.msk.f32.gmra.mxu2 %vm980_vm1, %v2392_v11  ;;  %v2723_v11 = vld [vmem:[%s4403_s20 + $0x38] sm:$0xff] }
 0xcdc   : > { %2743 = vmatpush.msra.mxu2 %v2723_v11 }
 0xcde   : > { %v3313_v63 = vpop.eup %3312 }
 0xcdf   : > { %v2516_v0 = vmul.f32 %v3313_v63, %v2499_v62  ;;  %vm2521_vm13 = vweird.f32 %v3313_v63 }
 0xce0   : > { %vm2522_vm15 = vmor %vm2520_vm14, %vm2521_vm13 }
 0xce1   : > { %v2517_v1 = vsub.f32 1.0, %v2516_v0  ;;  %v2721_v0 = vld [vmem:[%s4403_s20 + $0x28] sm:$0xff] }
 0xce2   : > { %v2553_v7 = vpop.f32.mrf.mxu1 }
 0xce3   : > { %v2518_v9 = vmul.f32 %v3313_v63, %v2517_v1  ;;  %3095 = vmatmul.msk.f32.vlgmr.msra.gmra.mxu3 %vm980_vm1, %v2553_v7  ;;  %v2720_v1 = vld [vmem:[%s4403_s20 + $0x20] sm:$0xff]  ;;  %v2718_v7 = vld [vmem:[%s4403_s20 + $0x10] sm:$0xff] }
 0xce5   : > { %v2519_v13 = vadd.f32 %v3313_v63, %v2518_v9  ;;  %v2717_v9 = vld [vmem:[%s4403_s20 + $0x8] sm:$0xff] }
 0xce7   : > { %v2523_v14 = vsel %vm2522_vm15, %v3313_v63, %v2519_v13  ;;  %v2722_v63 = vld [vmem:[%s4403_s20 + $0x30] sm:$0xff] }
 0xce8   : > { %v2528_v15 = vsel %vm2525_vm2, %v2527_v45, %v2523_v14  ;;  %2744 = vmatpush.msra.mxu2 %v2722_v63 }
 0xce9   : > { %v2529_v16 = vmul.f32 %v3311_v58, %v2528_v15 }
 0xcea   : > { %v2557_v17 = vpop.permute.xlu0 %2556  ;;  %2745 = vmatpush.msra.mxu2 %v2721_v0 }
 0xceb   : > { %2577 = vmatpush.msra.mxu0 %v2557_v17 }
 0xcec   : > { %3094 = vmatmul.msk.f32.vlgmr.msra.gmra.mxu0 %vm980_vm1, %v2529_v16  ;;  %2746 = vmatpush.msra.mxu2 %v2720_v1 }
 0xcee   : > { %2747 = vmatpush.msra.mxu2 %v2719_v6 }
 0xcf0   : > { %2748 = vmatpush.msra.mxu2 %v2718_v7 }
 0xcf2   : > { %2749 = vmatpush.msra.mxu2 %v2717_v9 }
 0xcf4   : > { %2750 = vmatpush.msra.mxu2 %v2716_v12 }
 0xd5e   : > { %v2421_v2 = vpop.f32.mrf.mxu2 }
 0xd5f   : > { %v2425_v35 = vadd.f32 %v2421_v2, %v2237_v34 }
 0xd66   : > { %v2605_v38 = vpop.f32.mrf.mxu3 }
 0xd67   : > { %v2611_v27 = vadd.f32 %v2605_v38, %v2424_v23 }
 0xd69   : > { %v2617_v28 = vadd.f32 %v3237_v24, %v2611_v27  ;;  %v2579_v29 = vpop.f32.mrf.mxu0 }
 0xd6a   : > { %3096 = vmatmul.msk.f32.gmra.mxu3 %vm980_vm1, %v2579_v29 }
 0xd6b   : > { %v2619_v30 = vadd.f32 %v2617_v28, %v4129_v19 }
 0xd6d   : > { %v2621_v5 = vsel %vm941_vm0, %v2619_v30, 0.0 }
 0xd6e   : > { %2622 = vadd.xlane.f32.xlu1 %v2621_v5  ;;  %v3241_v5 = vld [vmem:[%s4457_s12] ss:$0 sm:$0xff]  ;;  %s3546_s12 = sshra.s32 %s2834_s22, 4  ;;  %s3547_s12 = int_to_ptr.hbm [resolvable:$true] %s3546_s12 }
 0xd6f   : > { %s3548_s30 = scalar_lea.hbm %s3547_s12, 16  ;;  %p3553_p7 = scmp.lt.s32.totalorder %s3547_s12, %s4460_s1 }
 0xd70   : > { %p3549_p1 = scmp.ne.s32.totalorder %s3547_s12, %s3548_s30  ;;  %p3554_p8 = scmp.lt.s32.totalorder %s3552_s10, %s3548_s30 }
 0xd72   : > { %p3550_p5 = pnand %p3549_p1, %p3874_p4  ;;  %p3555_p9 = por %p3554_p8, %p3553_p7 }
 0xd74   : > { %p3551_p12 = pneg %p3550_p5 }
 0xd76   : > { %p3556_p10 = pnand %p3555_p9, %p3551_p12 }
 0xde1   : > { %v2623_v21 = vpop.xlane.xlu1 %2622 }
 0xde2   : > { %v2627_v32 = vmul.f32 %v2623_v21, %v4103_v47 }
 0xde4   : > { %v2629_v52 = vsub.f32 %v2619_v30, %v2627_v32 }
 0xde6   : > { %v2631_v33 = vmul.f32 %v2629_v52, %v2629_v52  ;;  %v2645_v58 = vmul.f32 %v3238_v49, %v2629_v52 }
 0xde8   : > { %v2633_v10 = vsel %vm941_vm0, %v2631_v33, 0.0 }
 0xde9   : > { %2634 = vadd.xlane.f32.xlu2 %v2633_v10 }
 0xded   : > { %v2608_v3 = vpop.f32.mrf.mxu3 }
 0xdee   : > { %v2612_v36 = vadd.f32 %v2608_v3, %v2425_v35 }
 0xdf0   : > { %v2618_v37 = vadd.f32 %v3237_v24, %v2612_v36 }
 0xdf2   : > { %v2620_v19 = vadd.f32 %v2618_v37, %v4181_v57 }
 0xdf4   : > { %v2624_v39 = vsel %vm941_vm0, %v2620_v19, 0.0 }
 0xdf5   : > { %2625 = vadd.xlane.f32.xlu0 %v2624_v39 }
 0xe5c   : > { %v2635_v41 = vpop.xlane.xlu2 %2634 }
 0xe5d   : > { %v2639_v60 = vmul.f32 %v2635_v41, %v4103_v47 }
 0xe5f   : > { %v2647_v42 = vadd.f32 1e-05, %v2639_v60 }
 0xe61   : > { %3314 = vrsqrt.f32 %v2647_v42  ;;  %vm2655_vm3 = vweird.f32 %v2647_v42 }
 0xe67   : > { %v3315_v43 = vpop.eup %3314 }
 0xe68   : > { %v2650_v44 = vmul.f32 %v3315_v43, %v2647_v42  ;;  %v2626_v46 = vpop.xlane.xlu0 %2625  ;;  %vm2656_vm1 = vweird.f32 %v3315_v43 }
 0xe69   : > { %v2628_v57 = vmul.f32 %v2626_v46, %v4103_v47  ;;  %vm2657_vm4 = vmor %vm2655_vm3, %vm2656_vm1 }
 0xe6a   : > { %v2651_v48 = vmul.f32 %v3315_v43, %v2650_v44 }
 0xe6b   : > { %v2630_v50 = vsub.f32 %v2620_v19, %v2628_v57 }
 0xe6c   : > { %v2652_v51 = vmul.f32 0.5, %v2651_v48 }
 0xe6d   : > { %v2632_v8 = vmul.f32 %v2630_v50, %v2630_v50  ;;  %v2646_v27 = vmul.f32 %v3238_v49, %v2630_v50 }
 0xe6e   : > { %v2653_v54 = vsub.f32 1.5, %v2652_v51  ;;  %v3242_v51 = vld [vmem:[%s4458_s6] ss:$0 sm:$0xff] }
 0xe6f   : > { %v2636_v55 = vsel %vm941_vm0, %v2632_v8, 0.0 }
 0xe70   : > { %v2654_v56 = vmul.f32 %v3315_v43, %v2653_v54  ;;  %2637 = vadd.xlane.f32.xlu1 %v2636_v55 }
 0xe72   : > { %v2658_v53 = vsel %vm2657_vm4, %v3315_v43, %v2654_v56 }
 0xe73   : > { %v2669_v61 = vmul.f32 %v2658_v53, %v2645_v58  ;;  %v3243_v58 = vld [vmem:[%s4459_s24] ss:$0 sm:$0xff] }
 0xe75   : > { %v2675_v62 = vadd.f32 %v3239_v59, %v2669_v61 }
 0xe77   : > { %3097 = vmatmul.msk.f32.vlgmr.msrb.gmra.mxu1 %vm941_vm0, %v2675_v62 }
 0xee3   : > { %v2638_v13 = vpop.xlane.xlu1 %2637 }
 0xee4   : > { %v2640_v45 = vmul.f32 %v2638_v13, %v4103_v47 }
 0xee6   : > { %v2648_v14 = vadd.f32 1e-05, %v2640_v45 }
 0xee8   : > { %3316 = vrsqrt.f32 %v2648_v14  ;;  %vm2665_vm7 = vweird.f32 %v2648_v14 }
 0xeee   : > { %v3317_v15 = vpop.eup %3316 }
 0xeef   : > { %v2660_v16 = vmul.f32 %v3317_v15, %v2648_v14  ;;  %vm2666_vm5 = vweird.f32 %v3317_v15 }
 0xef0   : > { %vm2667_vm8 = vmor %vm2665_vm7, %vm2666_vm5 }
 0xef1   : > { %v2661_v17 = vmul.f32 %v3317_v15, %v2660_v16 }
 0xef3   : > { %v2662_v20 = vmul.f32 0.5, %v2661_v17 }
 0xef4   : > { %v2708_v26 = vpop.f32.mrf.mxu1 }
 0xef5   : > { %v2663_v22 = vsub.f32 1.5, %v2662_v20  ;;  %v2709_v23 = vadd.f32 %v3240_v18, %v2708_v26 }
 0xef7   : > { %v2664_v24 = vmul.f32 %v3317_v15, %v2663_v22  ;;  %v2714_v38 = vmax.f32 %v2709_v23, 0.0 }
 0xef9   : > { %3099 = vmatmul.msk.f32.vlgmr.msra.gmra.mxu2 %vm2728_vm6, %v2714_v38  ;;  %v2668_v28 = vsel %vm2667_vm8, %v3317_v15, %v2664_v24 }
 0xefa   : > { %v2670_v29 = vmul.f32 %v2668_v28, %v2646_v27 }
 0xefc   : > { %v2676_v30 = vadd.f32 %v3239_v59, %v2670_v29 }
 0xefe   : > { %3098 = vmatmul.msk.f32.gmra.mxu1 %vm941_vm0, %v2676_v30 }
 0xf7b   : > { %v2711_v21 = vpop.f32.mrf.mxu1 }
 0xf7c   : > { %v2712_v32 = vadd.f32 %v3240_v18, %v2711_v21  ;;  %v2752_v52 = vpop.f32.mrf.mxu2 }
 0xf7d   : > { %v2753_v33 = vadd.f32 %v3241_v5, %v2752_v52 }
 0xf7e   : > { %v2715_v10 = vmax.f32 %v2712_v32, 0.0 }
 0xf7f   : > { %v2758_v2 = vadd.f32 %v2753_v33, %v2675_v62 }
 0xf80   : > { %3100 = vmatmul.msk.f32.gmra.mxu2 %vm2728_vm6, %v2715_v10 }
 0xf81   : > { %v2760_v34 = vsel %vm941_vm0, %v2758_v2, 0.0 }
 0xf82   : > { %2761 = vadd.xlane.f32.xlu0 %v2760_v34 }
 0xff5   : > { %v2762_v35 = vpop.xlane.xlu0 %2761 }
 0xff6   : > { %v2766_v3 = vmul.f32 %v2762_v35, %v4103_v47 }
 0xff8   : > { %v2768_v36 = vsub.f32 %v2758_v2, %v2766_v3 }
 0xffa   : > { %v2770_v37 = vmul.f32 %v2768_v36, %v2768_v36  ;;  %v2784_v56 = vmul.f32 %v3242_v51, %v2768_v36 }
 0xffc   : > { %v2772_v19 = vsel %vm941_vm0, %v2770_v37, 0.0 }
 0xffd   : > { %2773 = vadd.xlane.f32.xlu1 %v2772_v19 }
0x1003   : > { %v2755_v39 = vpop.f32.mrf.mxu2 }
0x1004   : > { %v2756_v40 = vadd.f32 %v3241_v5, %v2755_v39 }
0x1006   : > { %v2759_v25 = vadd.f32 %v2756_v40, %v2676_v30 }
0x1008   : > { %v2763_v4 = vsel %vm941_vm0, %v2759_v25, 0.0 }
0x1009   : > { %2764 = vadd.xlane.f32.xlu2 %v2763_v4 }
0x1070   : > { %v2774_v31 = vpop.xlane.xlu1 %2773 }
0x1071   : > { %v2778_v41 = vmul.f32 %v2774_v31, %v4103_v47 }
0x1073   : > { %v2786_v60 = vadd.f32 1e-05, %v2778_v41 }
0x1075   : > { %3318 = vrsqrt.f32 %v2786_v60  ;;  %vm2794_vm10 = vweird.f32 %v2786_v60 }
0x107b   : > { %v3319_v42 = vpop.eup %3318 }
0x107c   : > { %v2789_v43 = vmul.f32 %v3319_v42, %v2786_v60  ;;  %v2765_v44 = vpop.xlane.xlu2 %2764  ;;  %vm2795_vm9 = vweird.f32 %v3319_v42 }
0x107d   : > { %v2767_v46 = vmul.f32 %v2765_v44, %v4103_v47  ;;  %vm2796_vm11 = vmor %vm2794_vm10, %vm2795_vm9 }
0x107e   : > { %v2790_v57 = vmul.f32 %v3319_v42, %v2789_v43 }
0x107f   : > { %v2769_v48 = vsub.f32 %v2759_v25, %v2767_v46 }
0x1080   : > { %v2791_v50 = vmul.f32 0.5, %v2790_v57 }
0x1081   : > { %v2771_v49 = vmul.f32 %v2769_v48, %v2769_v48  ;;  %v2785_v13 = vmul.f32 %v3242_v51, %v2769_v48 }
0x1082   : > { %v2792_v8 = vsub.f32 1.5, %v2791_v50 }
0x1083   : > { %v2775_v54 = vsel %vm941_vm0, %v2771_v49, 0.0 }
0x1084   : > { %v2793_v55 = vmul.f32 %v3319_v42, %v2792_v8  ;;  %2776 = vadd.xlane.f32.xlu0 %v2775_v54 }
0x1086   : > { %v2797_v59 = vsel %vm2796_vm11, %v3319_v42, %v2793_v55 }
0x1087   : > { %v2808_v53 = vmul.f32 %v2797_v59, %v2784_v56 }
0x1089   : > { %v2814_v61 = vadd.f32 %v3243_v58, %v2808_v53 }
0x108b   : > { %2816 = vst.msk [vmem:[%s904_s21] sm:$0xff] %vm941_vm0, %v2814_v61 }
0x10f7   : > { %v2777_v62 = vpop.xlane.xlu0 %2776 }
0x10f8   : > { %v2779_v11 = vmul.f32 %v2777_v62, %v4103_v47 }
0x10fa   : > { %v2787_v63 = vadd.f32 1e-05, %v2779_v11 }
0x10fc   : > { %3320 = vrsqrt.f32 %v2787_v63  ;;  %vm2804_vm13 = vweird.f32 %v2787_v63 }
0x1102   : > { %v3321_v0 = vpop.eup %3320 }
0x1103   : > { %v2799_v1 = vmul.f32 %v3321_v0, %v2787_v63  ;;  %vm2805_vm12 = vweird.f32 %v3321_v0 }
0x1104   : > { %vm2806_vm14 = vmor %vm2804_vm13, %vm2805_vm12 }
0x1105   : > { %v2800_v6 = vmul.f32 %v3321_v0, %v2799_v1 }
0x1107   : > { %v2801_v7 = vmul.f32 0.5, %v2800_v6 }
0x1109   : > { %v2802_v9 = vsub.f32 1.5, %v2801_v7 }
0x110b   : > { %v2803_v12 = vmul.f32 %v3321_v0, %v2802_v9 }
0x110d   : > { %v2807_v47 = vsel %vm2806_vm14, %v3321_v0, %v2803_v12 }
0x110e   : > { %v2809_v45 = vmul.f32 %v2807_v47, %v2785_v13 }
0x1110   : > { %v2815_v14 = vadd.f32 %v3243_v58, %v2809_v45 }
0x1112   : > { %2817 = vst.msk [vmem:[%s904_s21 + $0x8] sm:$0xff] %vm941_vm0, %v2815_v14 }
0x1113   : > { %3559 = shalt.err (!%p3556_p10)
}
0x1114   : > { %s3632_s25 = smov 128   ;;  %s3633_s21 = smov 8  }
0x1115   : > { %3134 = dma.vmem_to_hbm [thread:$0]  (%p3874_p4), %s2832_s27, 256, %s2834_s22, %s2819_s7, %s3632_s25, %s3632_s25, %s3633_s21  }
0x1116 PF: > { %s2848_s2 = sand.u32 1, %s3598_s5   ;;  %p4461_p13 = scmp.ge.s32.totalorder %s3610_s28, 2 }
0x1117   : > { %s2849_s0 = scalar_lea.sflag [#allocation4], %s2848_s2 }
0x1118   : > { %p3160_p11 = pnand %p4461_p13, %p3878_p6 }
0x111a   : > { %p3161_p0 = pneg %p3160_p11 }
0x111c   : > { %3593 = dma.done.wait (%p3161_p0), %s2849_s0, 256  }
0x111d   : > { %3595 = vsyncadd (%p3161_p0), %s2849_s0, 4294967040  ;;  %s4462_s28 = sld [smem:[#allocation21_spill]]  ;;  %s4465_s5 = smov %s3602_s26 }
0x111e   : > { %s4463_s8 = sld [smem:[#allocation20_spill]] }
0x111f   : > { %s4464_s27 = sld [smem:[#allocation22_spill]] }
0x1123   : > { %p40_p2 = scmp.ge.s32.totalorder %s4462_s28, 4  }
0x1124   : > { %s4466_s26 = smov %s4463_s8 }
0x1125   :  { %42 = sbr.rel (!%p40_p2) target bundleno = 26 (0x1a), region = 194 }
0x112a   :  { %2855 = vsyncpa [#allocation3], 1 }
0x112b   :  { %2857 = vsyncpa [#allocation3 + $0x1], 1 }
0x112c   :  { %2858 = vsyncpa [#allocation6], 1 }
0x112d   :  { %2859 = vsyncpa [#allocation9], 1 }
0x112e   :  { %2860 = vsyncpa [#allocation12], 1 }
0x112f   :  { %2861 = vsyncpa [#allocation4], 1 }
0x1130   :  { %2863 = vsyncpa [#allocation4 + $0x1], 1 }

</bundles_post_ra>
